<compile_context>
chip_gen: v7x
topology: tpu7x:2x2x1
jax: 0.10.0
libtpu: 0.0.40
codegen_flags: <defaults>
</compile_context>

<pallas_src>
import jax
import jax.numpy as jnp
from jax.experimental import pallas as pl
from jax.experimental.pallas import tpu as pltpu


def _round_up(v, m):
    return ((v + m - 1) // m) * m


def senet_head_kernel(x_ref, w1_ref, b1_ref, w2_ref, b2_ref, wf_ref, bf_ref, o_ref):
    # x_ref: (NB, C, HW) in the streaming dtype (bf16 or f32); upcast before any math.
    x = x_ref[...].astype(jnp.float32)

    # SE.squeeze (== input of SENet.avgpool): per-(batch, channel) spatial mean.
    # Reducing the lane axis yields row-form (NB, C) pooled activations for the MXU.
    s = jnp.mean(x, axis=-1)                                           # (NB, C) f32

    # SE.compress (1x1 conv) + ReLU.
    h = jnp.dot(s, w1_ref[...], preferred_element_type=jnp.float32) + b1_ref[...]
    h = jnp.maximum(h, 0.0)                                            # (NB, Crp)

    # SE.excitation (1x1 conv) + sigmoid gate.
    e = jnp.dot(h, w2_ref[...], preferred_element_type=jnp.float32) + b2_ref[...]
    gate = 1.0 / (1.0 + jnp.exp(-e))                                   # (NB, C)

    # mean(x * gate) == mean(x) * gate (gate is spatially constant), then fc.
    pooled = s * gate                                                  # (NB, C)
    o_ref[...] = (jnp.dot(pooled, wf_ref[...],
                          preferred_element_type=jnp.float32)
                  + bf_ref[...]).astype(o_ref.dtype)                   # (NB, NCp)


def senet_head(x_nchw, w1, b1, w2, b2, wf, bf, *, batch_block=8):
    """x_nchw: (N, C, H, W) backbone feature map (float32 or bfloat16).

    w1: (C//r, C, 1, 1), b1: (C//r,)      -- SE.compress
    w2: (C, C//r, 1, 1), b2: (C,)         -- SE.excitation
    wf: (num_classes, C), bf: (num_classes,) -- fc
    returns (N, num_classes) float32 logits.
    """
    N, C, H, W = x_nchw.shape
    HW = H * W
    Cr = w1.shape[0]
    NC = wf.shape[0]
    Crp = _round_up(Cr, 128)
    NCp = _round_up(NC, 128)

    # NCHW -> (N, C, HW) is a free reshape (no transpose, no extra HBM pass).
    x3 = x_nchw.reshape(N, C, HW)
    x_bytes = x3.dtype.itemsize

    # Batch rows per grid step: sublane-dense (up to 8), capped so the double-buffered
    # x block stays comfortably inside VMEM (including the 64 MiB v7x budget).
    nb = min(max(N, 1), batch_block)
    while nb > 1 and 2 * nb * C * HW * x_bytes > 8 * 1024 * 1024:
        nb //= 2
    grid = -(-N // nb)
    n_pad = grid * nb
    if n_pad != N:
        x3 = jnp.pad(x3, ((0, n_pad - N), (0, 0), (0, 0)))

    f32 = jnp.float32
    # Pre-transposed, zero-padded weights: matmuls are row-form (y = s @ W^T + b) and
    # the small dims (Cr, NC) become lane-dense multiples of 128. Zero padding is
    # exact: padded h columns are relu(0) = 0 and padded w2 rows / wf columns are 0.
    w1t = jnp.zeros((C, Crp), f32).at[:, :Cr].set(w1.reshape(Cr, C).T.astype(f32))
    b1r = jnp.zeros((1, Crp), f32).at[:, :Cr].set(b1.reshape(1, Cr).astype(f32))
    w2t = jnp.zeros((Crp, C), f32).at[:Cr, :].set(w2.reshape(C, Cr).T.astype(f32))
    b2r = b2.reshape(1, C).astype(f32)
    wft = jnp.zeros((C, NCp), f32).at[:, :NC].set(wf.T.astype(f32))
    bfr = jnp.zeros((1, NCp), f32).at[:, :NC].set(bf.reshape(1, NC).astype(f32))

    weight_bytes = 4 * (C * Crp + Crp + Crp * C + C + C * NCp + NCp)
    cost = pl.CostEstimate(
        flops=int(n_pad * (C * HW + 2 * C * Crp + 2 * Crp * C + 2 * C + 2 * C * NCp)),
        transcendentals=int(n_pad * C),
        bytes_accessed=int(n_pad * C * HW * x_bytes + weight_bytes + n_pad * NCp * 4),
    )

    out = pl.pallas_call(
        senet_head_kernel,
        out_shape=jax.ShapeDtypeStruct((n_pad, NCp), jnp.float32),
        grid_spec=pltpu.PrefetchScalarGridSpec(
            num_scalar_prefetch=0,
            grid=(grid,),
            in_specs=[
                pl.BlockSpec((nb, C, HW), lambda g: (g, 0, 0)),  # x rows for this step
                pl.BlockSpec((C, Crp), lambda g: (0, 0)),        # compress weight^T
                pl.BlockSpec((1, Crp), lambda g: (0, 0)),        # compress bias
                pl.BlockSpec((Crp, C), lambda g: (0, 0)),        # excitation weight^T
                pl.BlockSpec((1, C), lambda g: (0, 0)),          # excitation bias
                pl.BlockSpec((C, NCp), lambda g: (0, 0)),        # fc weight^T
                pl.BlockSpec((1, NCp), lambda g: (0, 0)),        # fc bias
            ],
            out_specs=pl.BlockSpec((nb, NCp), lambda g: (g, 0)),
        ),
        compiler_params=pltpu.CompilerParams(
            # TODO(synk): with grid == 1 (tiny N) only one v7x TensorCore gets work;
            # splitting HW/C over a second parallel axis is omitted for simplicity.
            dimension_semantics=("parallel",),
            vmem_limit_bytes=32 * 1024 * 1024,
        ),
        cost_estimate=cost,
    )(x3, w1t, b1r, w2t, b2r, wft, bfr)
    return out[:N, :NC]


def reference(x, w1, b1, w2, b2, wf, bf):
    """Pure-JAX reference mirroring the PyTorch forward order (post-backbone)."""
    N, C, H, W = x.shape
    Cr = w1.shape[0]
    s = jnp.mean(x, axis=(2, 3))                              # AdaptiveAvgPool2d((1,1))
    h = jnp.maximum(s @ w1.reshape(Cr, C).T + b1, 0.0)        # compress + relu
    e = h @ w2.reshape(C, Cr).T + b2                          # excitation
    gate = jax.nn.sigmoid(e)
    gated = x * gate[:, :, None, None]                        # x * sigmoid(out)
    pooled = jnp.mean(gated, axis=(2, 3))                     # avgpool + flatten
    return pooled @ wf.T + bf                                  # fc


if __name__ == "__main__":
    # Small shapes consistent with the module (SE(in_chnls, ratio=16), fc -> 100 classes).
    N, C, H, W = 2, 256, 8, 8
    ratio = 16
    Cr = C // ratio
    num_classes = 100

    key = jax.random.PRNGKey(0)
    kx, k1, k2, k3, k4, k5, k6 = jax.random.split(key, 7)

    x = jax.random.normal(kx, (N, C, H, W), dtype=jnp.float32)
    w1 = jax.random.normal(k1, (Cr, C, 1, 1), dtype=jnp.float32) * 0.05   # SE.compress
    b1 = jax.random.normal(k2, (Cr,), dtype=jnp.float32) * 0.05
    w2 = jax.random.normal(k3, (C, Cr, 1, 1), dtype=jnp.float32) * 0.05   # SE.excitation
    b2 = jax.random.normal(k4, (C,), dtype=jnp.float32) * 0.05
    wf = jax.random.normal(k5, (num_classes, C), dtype=jnp.float32) * 0.05  # fc
    bf = jax.random.normal(k6, (num_classes,), dtype=jnp.float32) * 0.05

    # Stream the feature map in bf16 (what a TPU backbone would emit); all in-kernel
    # math is f32, so validate against the reference on the same quantized values.
    x_bf16 = x.astype(jnp.bfloat16)

    out = senet_head(x_bf16, w1, b1, w2, b2, wf, bf)
    out = jax.block_until_ready(out)

    ref = reference(x_bf16.astype(jnp.float32), w1, b1, w2, b2, wf, bf)
    assert out.shape == (N, num_classes)
    assert jnp.allclose(out, ref, rtol=2e-4, atol=2e-4), (
        f"max abs err = {jnp.max(jnp.abs(out - ref))}")

    print("KERNEL_OK")
</pallas_src>

<mosaic_0001>
module attributes {stable_mosaic.version = 11 : i64} {
  func.func @senet_head_kernel(%arg0: i32, %arg1: memref<2x256x64xbf16, #tpu.memory_space<vmem>>, %arg2: memref<256x128xf32, #tpu.memory_space<vmem>>, %arg3: memref<1x128xf32, #tpu.memory_space<vmem>>, %arg4: memref<128x256xf32, #tpu.memory_space<vmem>>, %arg5: memref<1x256xf32, #tpu.memory_space<vmem>>, %arg6: memref<256x128xf32, #tpu.memory_space<vmem>>, %arg7: memref<1x128xf32, #tpu.memory_space<vmem>>, %arg8: memref<2x128xf32, #tpu.memory_space<vmem>>) attributes {dimension_semantics = [#tpu.dimension_semantics<parallel>], iteration_bounds = array<i64: 1>, scalar_prefetch = 0 : i64, scratch_operands = 0 : i64, tpu.core_type = #tpu.core_type<tc>, window_params = [{transform_indices = @transform_0, window_bounds = array<i64: 2, 256, 64>}, {pipeline_mode = #tpu.pipeline_mode<synchronous>, transform_indices = @transform_1, window_bounds = array<i64: 256, 128>}, {pipeline_mode = #tpu.pipeline_mode<synchronous>, transform_indices = @transform_2, window_bounds = array<i64: 1, 128>}, {pipeline_mode = #tpu.pipeline_mode<synchronous>, transform_indices = @transform_3, window_bounds = array<i64: 128, 256>}, {pipeline_mode = #tpu.pipeline_mode<synchronous>, transform_indices = @transform_4, window_bounds = array<i64: 1, 256>}, {pipeline_mode = #tpu.pipeline_mode<synchronous>, transform_indices = @transform_5, window_bounds = array<i64: 256, 128>}, {pipeline_mode = #tpu.pipeline_mode<synchronous>, transform_indices = @transform_6, window_bounds = array<i64: 1, 128>}, {transform_indices = @transform_7, window_bounds = array<i64: 2, 128>}]} {
    %c0 = arith.constant 0 : index
    %c0_0 = arith.constant 0 : index
    %c0_1 = arith.constant 0 : index
    %0 = vector.load %arg1[%c0, %c0_0, %c0_1] : memref<2x256x64xbf16, #tpu.memory_space<vmem>>, vector<2x256x64xbf16>
    %1 = arith.extf %0 : vector<2x256x64xbf16> to vector<2x256x64xf32>
    %cst = arith.constant dense<0.000000e+00> : vector<2x256xf32>
    %2 = vector.multi_reduction <add>, %1, %cst [2] : vector<2x256x64xf32> to vector<2x256xf32>
    %cst_2 = arith.constant 6.400000e+01 : f32
    %3 = vector.broadcast %cst_2 : f32 to vector<2x256xf32>
    %4 = arith.divf %2, %3 : vector<2x256xf32>
    %c0_3 = arith.constant 0 : index
    %c0_4 = arith.constant 0 : index
    %5 = vector.load %arg2[%c0_3, %c0_4] : memref<256x128xf32, #tpu.memory_space<vmem>>, vector<256x128xf32>
    %cst_5 = arith.constant dense<0.000000e+00> : vector<2x128xf32>
    %6 = tpu.matmul %4, %5, %cst_5 {dimension_numbers = #tpu.dot_dimension_numbers<[1], [0], [0], [1], [0, 0, 1, 1], [], []>} : vector<2x256xf32>, vector<256x128xf32>, vector<2x128xf32> -> vector<2x128xf32>
    %c0_6 = arith.constant 0 : index
    %c0_7 = arith.constant 0 : index
    %7 = vector.load %arg3[%c0_6, %c0_7] : memref<1x128xf32, #tpu.memory_space<vmem>>, vector<1x128xf32>
    %8 = vector.broadcast %7 : vector<1x128xf32> to vector<2x128xf32>
    %9 = arith.addf %6, %8 : vector<2x128xf32>
    %cst_8 = arith.constant 0.000000e+00 : f32
    %10 = vector.broadcast %cst_8 : f32 to vector<2x128xf32>
    %11 = arith.maximumf %9, %10 : vector<2x128xf32>
    %c0_9 = arith.constant 0 : index
    %c0_10 = arith.constant 0 : index
    %12 = vector.load %arg4[%c0_9, %c0_10] : memref<128x256xf32, #tpu.memory_space<vmem>>, vector<128x256xf32>
    %cst_11 = arith.constant dense<0.000000e+00> : vector<2x256xf32>
    %13 = tpu.matmul %11, %12, %cst_11 {dimension_numbers = #tpu.dot_dimension_numbers<[1], [0], [0], [1], [0, 0, 1, 1], [], []>} : vector<2x128xf32>, vector<128x256xf32>, vector<2x256xf32> -> vector<2x256xf32>
    %c0_12 = arith.constant 0 : index
    %c0_13 = arith.constant 0 : index
    %14 = vector.load %arg5[%c0_12, %c0_13] : memref<1x256xf32, #tpu.memory_space<vmem>>, vector<1x256xf32>
    %15 = vector.broadcast %14 : vector<1x256xf32> to vector<2x256xf32>
    %16 = arith.addf %13, %15 : vector<2x256xf32>
    %cst_14 = arith.constant 0.000000e+00 : f32
    %17 = vector.broadcast %cst_14 : f32 to vector<2x256xf32>
    %18 = arith.subf %17, %16 : vector<2x256xf32>
    %19 = math.exp %18 : vector<2x256xf32>
    %cst_15 = arith.constant 1.000000e+00 : f32
    %20 = vector.broadcast %cst_15 : f32 to vector<2x256xf32>
    %21 = arith.addf %20, %19 : vector<2x256xf32>
    %cst_16 = arith.constant 1.000000e+00 : f32
    %22 = vector.broadcast %cst_16 : f32 to vector<2x256xf32>
    %23 = arith.divf %22, %21 : vector<2x256xf32>
    %24 = arith.mulf %4, %23 : vector<2x256xf32>
    %c0_17 = arith.constant 0 : index
    %c0_18 = arith.constant 0 : index
    %25 = vector.load %arg6[%c0_17, %c0_18] : memref<256x128xf32, #tpu.memory_space<vmem>>, vector<256x128xf32>
    %cst_19 = arith.constant dense<0.000000e+00> : vector<2x128xf32>
    %26 = tpu.matmul %24, %25, %cst_19 {dimension_numbers = #tpu.dot_dimension_numbers<[1], [0], [0], [1], [0, 0, 1, 1], [], []>} : vector<2x256xf32>, vector<256x128xf32>, vector<2x128xf32> -> vector<2x128xf32>
    %c0_20 = arith.constant 0 : index
    %c0_21 = arith.constant 0 : index
    %27 = vector.load %arg7[%c0_20, %c0_21] : memref<1x128xf32, #tpu.memory_space<vmem>>, vector<1x128xf32>
    %28 = vector.broadcast %27 : vector<1x128xf32> to vector<2x128xf32>
    %29 = arith.addf %26, %28 : vector<2x128xf32>
    %c0_22 = arith.constant 0 : index
    %c0_23 = arith.constant 0 : index
    %30 = vector.load %arg8[%c0_22, %c0_23] : memref<2x128xf32, #tpu.memory_space<vmem>>, vector<2x128xf32>
    tpu.vector_store %arg8[%c0_22, %c0_23], %29 {strides = array<i32>} : memref<2x128xf32, #tpu.memory_space<vmem>>, vector<2x128xf32>,
    return
  }
  func.func @transform_0(%arg0: i32) -> (i32, i32, i32) {
    %c0_i32 = arith.constant 0 : i32
    %c0_i32_0 = arith.constant 0 : i32
    %c0_i32_1 = arith.constant 0 : i32
    return %arg0, %c0_i32, %c0_i32_0 : i32, i32, i32
  }
  func.func @transform_1(%arg0: i32) -> (i32, i32) {
    %c0_i32 = arith.constant 0 : i32
    %c0_i32_0 = arith.constant 0 : i32
    %c0_i32_1 = arith.constant 0 : i32
    return %c0_i32, %c0_i32_0 : i32, i32
  }
  func.func @transform_2(%arg0: i32) -> (i32, i32) {
    %c0_i32 = arith.constant 0 : i32
    %c0_i32_0 = arith.constant 0 : i32
    %c0_i32_1 = arith.constant 0 : i32
    return %c0_i32, %c0_i32_0 : i32, i32
  }
  func.func @transform_3(%arg0: i32) -> (i32, i32) {
    %c0_i32 = arith.constant 0 : i32
    %c0_i32_0 = arith.constant 0 : i32
    %c0_i32_1 = arith.constant 0 : i32
    return %c0_i32, %c0_i32_0 : i32, i32
  }
  func.func @transform_4(%arg0: i32) -> (i32, i32) {
    %c0_i32 = arith.constant 0 : i32
    %c0_i32_0 = arith.constant 0 : i32
    %c0_i32_1 = arith.constant 0 : i32
    return %c0_i32, %c0_i32_0 : i32, i32
  }
  func.func @transform_5(%arg0: i32) -> (i32, i32) {
    %c0_i32 = arith.constant 0 : i32
    %c0_i32_0 = arith.constant 0 : i32
    %c0_i32_1 = arith.constant 0 : i32
    return %c0_i32, %c0_i32_0 : i32, i32
  }
  func.func @transform_6(%arg0: i32) -> (i32, i32) {
    %c0_i32 = arith.constant 0 : i32
    %c0_i32_0 = arith.constant 0 : i32
    %c0_i32_1 = arith.constant 0 : i32
    return %c0_i32, %c0_i32_0 : i32, i32
  }
  func.func @transform_7(%arg0: i32) -> (i32, i32) {
    %c0_i32 = arith.constant 0 : i32
    %c0_i32_0 = arith.constant 0 : i32
    return %arg0, %c0_i32 : i32, i32
  }
}

</mosaic_0001>

<bundles_post_ra>
// kernel: tpu_custom_call.1
= control target key start
LH: loop header
LB: loop body
LE: loop exit
PB: predicated region body
PF: predicated region fallthrough
CT: control target
= control target key end

     0   :  { %12 = vsyncpa [#allocation3], 0  ;;  %s3959_s0 = inlined_call_operand.vmem [shape: bf16[2,256,64], index: 0, kind: input, shape index: {}]   ;;  %s3960_s1 = inlined_call_operand.vmem [shape: f32[256,128], index: 1, kind: input, shape index: {}]   ;;  %s3961_s2 = inlined_call_operand.vmem [shape: f32[1,128], index: 2, kind: input, shape index: {}]   ;;  %s3962_s3 = inlined_call_operand.hbm [shape: f32[128,256], index: 3, kind: input, shape index: {}]   ;;  %s3963_s4 = inlined_call_operand.vmem [shape: f32[1,256], index: 4, kind: input, shape index: {}]   ;;  %s3964_s5 = inlined_call_operand.hbm [shape: f32[256,128], index: 5, kind: input, shape index: {}]   ;;  %s3965_s6 = inlined_call_operand.vmem [shape: f32[1,128], index: 6, kind: input, shape index: {}]   ;;  %s3966_s7 = inlined_call_operand.hbm [shape: f32[2,128], index: 7, kind: output, shape index: {}]  }
   0x1   :  { %13 = vsyncpa [#allocation6], 0 }
   0x2   :  { %14 = vsyncpa [#allocation4], 0  ;;  %s2773_s24 = smov [#allocation2]   ;;  %s2701_s28 = scalar_lea.hbm %s3962_s3, 4096 }
   0x3   :  { %s26_s25 = sshll.u32 %s2773_s24, 4  ;;  %p2702_p0 = scmp.ne.s32.totalorder %s3962_s3, %s2701_s28  ;;  %s27_s25 = int_to_ptr.vmem [resolvable:$true] %s26_s25 }
   0x4   :  { %p2705_p1 = scmp.lt.u32.totalorder %s2701_s28, %s3962_s3 }
   0x6   :  { %p2707_p2 = pnand %p2705_p1, %p2702_p0 }
   0x8   :  { %2710 = shalt.err (!%p2707_p2)
}
   0x9   :  { %s2711_s10 = scalar_lea.vmem %s27_s25, 4096  ;;  %p2716_p4 = scmp.lt.s32.totalorder %s27_s25, %s27_s25 }
   0xa   :  { %p2712_p3 = scmp.ne.s32.totalorder %s27_s25, %s2711_s10  ;;  %p2717_p5 = scmp.lt.s32.totalorder %s2711_s10, %s2711_s10 }
   0xc   :  { %p2718_p6 = por %p2717_p5, %p2716_p4 }
   0xe   :  { %p2719_p7 = pnand %p2718_p6, %p2712_p3 }
  0x10   :  { %2722 = shalt.err (!%p2719_p7)
}
  0x11   :  { %s2774_s11 = smov 256   ;;  %s2775_s12 = smov 16  }
  0x12   :  { %32 = dma.hbm_to_vmem [thread:$0]  %s3962_s3, 4096, %s27_s25, [#allocation3], %s2774_s11, %s2774_s11, %s2775_s12  }
  0x13   :  { %s2776_s15 = smov [#allocation5]   ;;  %s2723_s19 = scalar_lea.hbm %s3964_s5, 4096 }
  0x14   :  { %s40_s16 = sshll.u32 %s2776_s15, 4  ;;  %p2724_p8 = scmp.ne.s32.totalorder %s3964_s5, %s2723_s19  ;;  %s41_s16 = int_to_ptr.vmem [resolvable:$true] %s40_s16 }
  0x15   :  { %p2727_p9 = scmp.lt.u32.totalorder %s2723_s19, %s3964_s5 }
  0x17   :  { %p2729_p10 = pnand %p2727_p9, %p2724_p8 }
  0x19   :  { %2732 = shalt.err (!%p2729_p10)
}
  0x1a   :  { %s2733_s24 = scalar_lea.vmem %s41_s16, 4096  ;;  %p2738_p12 = scmp.lt.s32.totalorder %s41_s16, %s41_s16 }
  0x1b   :  { %p2734_p11 = scmp.ne.s32.totalorder %s41_s16, %s2733_s24  ;;  %p2739_p13 = scmp.lt.s32.totalorder %s2733_s24, %s2733_s24 }
  0x1d   :  { %p2740_p0 = por %p2739_p13, %p2738_p12 }
  0x1f   :  { %p2741_p1 = pnand %p2740_p0, %p2734_p11 }
  0x21   :  { %2744 = shalt.err (!%p2741_p1)
}
  0x22   :  { %s2777_s3 = smov 128   ;;  %s2778_s25 = smov 8  }
  0x23   :  { %46 = dma.hbm_to_vmem [thread:$0]  %s3964_s5, 4096, %s41_s16, [#allocation6], %s2777_s3, %s2777_s3, %s2778_s25  }
  0x24   :  { %2767 = dma.done.wait [#allocation3], 4096  }
  0x25   :  { %2768 = vsyncadd [#allocation3], 4294963200 }
  0x26   :  { %2769 = dma.done.wait [#allocation6], 4096  }
  0x27   :  { %2770 = vsyncadd [#allocation6], 4294963200  ;;  %v2348_v0 = vld [vmem:[%s3959_s0 + $0xc0] sm:$0xff]   ;;  %vm183_vm0 = vcmask 523264   ;;  %v2333_v14 = vld [vmem:[%s3959_s0 + $0x48] sm:$0xff]   ;;  %vm555_vm1 = vcmask 130112  }
  0x28   :  { %v2332_v1 = vld [vmem:[%s3959_s0 + $0x40] sm:$0xff]   ;;  %v2295_v2 = vunpack.c.l.bf16 %v2348_v0  ;;  %v2296_v4 = vunpack.c.h.bf16 %v2348_v0  ;;  %v2235_v18 = vunpack.c.l.bf16 %v2333_v14  ;;  %v2349_v19 = vld [vmem:[%s3959_s0 + $0xc8] sm:$0xff]   ;;  %v2236_v27 = vunpack.c.h.bf16 %v2333_v14  ;;  %v2334_v34 = vld [vmem:[%s3959_s0 + $0x50] sm:$0xff]   ;;  %s2781_s8 = smov [#allocation7]  }
  0x29   :  { %v2231_v3 = vunpack.c.l.bf16 %v2332_v1  ;;  %v2232_v5 = vunpack.c.h.bf16 %v2332_v1  ;;  %v2198_v6 = vld [vmem:[%s3959_s0] sm:$0xff]   ;;  %v2299_v22 = vunpack.c.l.bf16 %v2349_v19  ;;  %v2325_v24 = vld [vmem:[%s3959_s0 + $0x8] sm:$0xff]   ;;  %v2300_v32 = vunpack.c.h.bf16 %v2349_v19  ;;  %v2350_v39 = vld [vmem:[%s3959_s0 + $0xd0] sm:$0xff]   ;;  %s2185_s9 = sshll.u32 %s2781_s8, 4  ;;  %s2186_s9 = int_to_ptr.vmem [resolvable:$true] %s2185_s9 }
  0x2a   :  { %v328_v7 = vsel %vm183_vm0, %v2295_v2, 0.0  ;;  %v331_v9 = vsel %vm183_vm0, %v2296_v4, 0.0  ;;  %v2200_v11 = vunpack.c.h.bf16 %v2198_v6  ;;  %v2199_v12 = vunpack.c.l.bf16 %v2198_v6  ;;  %v2340_v13 = vld [vmem:[%s3959_s0 + $0x80] sm:$0xff]   ;;  %v2341_v29 = vld [vmem:[%s3959_s0 + $0x88] sm:$0xff]   ;;  %v2326_v44 = vld [vmem:[%s3959_s0 + $0x10] sm:$0xff]   ;;  %s2745_s10 = scalar_lea.vmem %s2186_s9, 32  ;;  %p2750_p3 = scmp.lt.s32.totalorder %s2186_s9, %s2186_s9 }
  0x2b   :  { %v232_v8 = vsel %vm183_vm0, %v2231_v3, 0.0  ;;  %329 = vadd.xlane.f32.xlu1 %v328_v7  ;;  %v235_v10 = vsel %vm183_vm0, %v2232_v5, 0.0  ;;  %v2263_v17 = vunpack.c.l.bf16 %v2340_v13  ;;  %v238_v21 = vsel %vm183_vm0, %v2235_v18, 0.0  ;;  %v2342_v49 = vld [vmem:[%s3959_s0 + $0x90] sm:$0xff]   ;;  %v2335_v54 = vld [vmem:[%s3959_s0 + $0x58] sm:$0xff]   ;;  %p2746_p2 = scmp.ne.s32.totalorder %s2186_s9, %s2745_s10  ;;  %p2751_p4 = scmp.lt.s32.totalorder %s2745_s10, %s2745_s10 }
  0x2c   :  { %233 = vadd.xlane.f32.xlu0 %v232_v8  ;;  %v187_v15 = vsel %vm183_vm0, %v2200_v11, 0.0  ;;  %v184_v16 = vsel %vm183_vm0, %v2199_v12, 0.0  ;;  %v2264_v23 = vunpack.c.h.bf16 %v2340_v13  ;;  %v334_v25 = vsel %vm183_vm0, %v2299_v22, 0.0  ;;  %v2351_v59 = vld [vmem:[%s3959_s0 + $0xd8] sm:$0xff]  }
  0x2d   :  { %v280_v20 = vsel %vm183_vm0, %v2263_v17, 0.0  ;;  %v2203_v28 = vunpack.c.l.bf16 %v2325_v24  ;;  %v241_v30 = vsel %vm183_vm0, %v2236_v27, 0.0  ;;  %v2267_v33 = vunpack.c.l.bf16 %v2341_v29  ;;  %v2327_v0 = vld [vmem:[%s3959_s0 + $0x18] sm:$0xff]   ;;  %p2752_p5 = por %p2751_p4, %p2750_p3 }
  0x2e   :  { %v283_v26 = vsel %vm183_vm0, %v2264_v23, 0.0  ;;  %v337_v35 = vsel %vm183_vm0, %v2300_v32, 0.0  ;;  %v2239_v37 = vunpack.c.l.bf16 %v2334_v34  ;;  %v2204_v38 = vunpack.c.h.bf16 %v2325_v24  ;;  %v2343_v5 = vld [vmem:[%s3959_s0 + $0x98] sm:$0xff]  }
  0x2f   :  { %332 = vadd.xlane.f32.xlu1 %v331_v9  ;;  %v190_v31 = vsel %vm183_vm0, %v2203_v28, 0.0  ;;  %v286_v36 = vsel %vm183_vm0, %v2267_v33, 0.0  ;;  %v2303_v42 = vunpack.c.l.bf16 %v2350_v39  ;;  %v2268_v43 = vunpack.c.h.bf16 %v2341_v29  ;;  %p2753_p6 = pnand %p2752_p5, %p2746_p2 }
  0x30   :  { %236 = vadd.xlane.f32.xlu0 %v235_v10  ;;  %v244_v40 = vsel %vm183_vm0, %v2239_v37, 0.0  ;;  %v193_v41 = vsel %vm183_vm0, %v2204_v38, 0.0  ;;  %v2240_v47 = vunpack.c.h.bf16 %v2334_v34  ;;  %v2207_v48 = vunpack.c.l.bf16 %v2326_v44  ;;  %v2336_v10 = vld [vmem:[%s3959_s0 + $0x60] sm:$0xff]  }
  0x31   :  { %v340_v45 = vsel %vm183_vm0, %v2303_v42, 0.0  ;;  %v289_v46 = vsel %vm183_vm0, %v2268_v43, 0.0  ;;  %v2304_v52 = vunpack.c.h.bf16 %v2350_v39  ;;  %v2271_v53 = vunpack.c.l.bf16 %v2342_v49 }
  0x32   :  { %v247_v50 = vsel %vm183_vm0, %v2240_v47, 0.0  ;;  %v196_v51 = vsel %vm183_vm0, %v2207_v48, 0.0  ;;  %v2243_v57 = vunpack.c.l.bf16 %v2335_v54  ;;  %v2208_v58 = vunpack.c.h.bf16 %v2326_v44 }
  0x33   :  { %188 = vadd.xlane.f32.xlu1 %v187_v15  ;;  %v343_v55 = vsel %vm183_vm0, %v2304_v52, 0.0  ;;  %v292_v56 = vsel %vm183_vm0, %v2271_v53, 0.0  ;;  %v2307_v62 = vunpack.c.l.bf16 %v2351_v59  ;;  %v2272_v63 = vunpack.c.h.bf16 %v2342_v49  ;;  %v2352_v15 = vld [vmem:[%s3959_s0 + $0xe0] sm:$0xff]  }
  0x34   :  { %185 = vadd.xlane.f32.xlu0 %v184_v16  ;;  %v250_v60 = vsel %vm183_vm0, %v2243_v57, 0.0  ;;  %v199_v61 = vsel %vm183_vm0, %v2208_v58, 0.0  ;;  %v2244_v3 = vunpack.c.h.bf16 %v2335_v54  ;;  %v2211_v4 = vunpack.c.l.bf16 %v2327_v0 }
  0x35   :  { %v346_v1 = vsel %vm183_vm0, %v2307_v62, 0.0  ;;  %v295_v2 = vsel %vm183_vm0, %v2272_v63, 0.0  ;;  %v2308_v8 = vunpack.c.h.bf16 %v2351_v59  ;;  %v2275_v9 = vunpack.c.l.bf16 %v2343_v5 }
  0x36   :  { %v253_v6 = vsel %vm183_vm0, %v2244_v3, 0.0  ;;  %v202_v7 = vsel %vm183_vm0, %v2211_v4, 0.0  ;;  %v2247_v13 = vunpack.c.l.bf16 %v2336_v10  ;;  %v2212_v14 = vunpack.c.h.bf16 %v2327_v0 }
  0x37   :  { %281 = vadd.xlane.f32.xlu1 %v280_v20  ;;  %v349_v11 = vsel %vm183_vm0, %v2308_v8, 0.0  ;;  %v298_v12 = vsel %vm183_vm0, %v2275_v9, 0.0  ;;  %v2311_v18 = vunpack.c.l.bf16 %v2352_v15  ;;  %v2276_v19 = vunpack.c.h.bf16 %v2343_v5  ;;  %v2328_v20 = vld [vmem:[%s3959_s0 + $0x20] sm:$0xff]  }
  0x38   :  { %239 = vadd.xlane.f32.xlu0 %v238_v21  ;;  %v256_v16 = vsel %vm183_vm0, %v2247_v13, 0.0  ;;  %v205_v17 = vsel %vm183_vm0, %v2212_v14, 0.0  ;;  %v2248_v23 = vunpack.c.h.bf16 %v2336_v10  ;;  %v2215_v24 = vunpack.c.l.bf16 %v2328_v20 }
  0x39   :  { %v352_v21 = vsel %vm183_vm0, %v2311_v18, 0.0  ;;  %v301_v22 = vsel %vm183_vm0, %v2276_v19, 0.0  ;;  %v2312_v28 = vunpack.c.h.bf16 %v2352_v15  ;;  %v2216_v34 = vunpack.c.h.bf16 %v2328_v20 }
  0x3a   :  { %v208_v27 = vsel %vm183_vm0, %v2215_v24, 0.0  ;;  %vm562_vm2 = vcmask 195712   ;;  %vm569_vm3 = vcmask 261312   ;;  %vm576_vm4 = vcmask 326912  }
  0x3b   :  { %335 = vadd.xlane.f32.xlu1 %v334_v25  ;;  %v2344_v25 = vld [vmem:[%s3959_s0 + $0xa0] sm:$0xff]   ;;  %v211_v37 = vsel %vm183_vm0, %v2216_v34, 0.0  ;;  %vm583_vm5 = vcmask 392512   ;;  %vm590_vm6 = vcmask 458112   ;;  %vm597_vm7 = vcmask 523712  }
  0x3c   :  { %284 = vadd.xlane.f32.xlu0 %v283_v26  ;;  %v259_v26 = vsel %vm183_vm0, %v2248_v23, 0.0  ;;  %v2279_v29 = vunpack.c.l.bf16 %v2344_v25  ;;  %v2280_v39 = vunpack.c.h.bf16 %v2344_v25  ;;  %v2347_v23 = vld [vmem:[%s3959_s0 + $0xb8] sm:$0xff]   ;;  %v441_v25 = vld [vmem:[%s3960_s1] sm:$0xff]  ;;  %vm604_vm8 = vcmask 589312  }
  0x3d   :  { %vm611_vm9 = vcmask 654912   ;;  %vm618_vm10 = vcmask 720512   ;;  %vm625_vm11 = vcmask 786112   ;;  %vm632_vm12 = vcmask 851712  }
  0x3e   :  { %v304_v32 = vsel %vm183_vm0, %v2279_v29, 0.0  ;;  %v307_v42 = vsel %vm183_vm0, %v2280_v39, 0.0  ;;  %vm639_vm13 = vcmask 917312   ;;  %vm646_vm14 = vcmask 982912  }
  0x3f   :  { %242 = vadd.xlane.f32.xlu1 %v241_v30  ;;  %v2337_v30 = vld [vmem:[%s3959_s0 + $0x68] sm:$0xff]   ;;  %vm653_vm15 = vcmask 1048512  }
  0x40   :  { %191 = vadd.xlane.f32.xlu0 %v190_v31  ;;  %v355_v31 = vsel %vm183_vm0, %v2312_v28, 0.0  ;;  %v2251_v33 = vunpack.c.l.bf16 %v2337_v30  ;;  %v2252_v43 = vunpack.c.h.bf16 %v2337_v30 }
  0x43   :  { %338 = vadd.xlane.f32.xlu1 %v337_v35  ;;  %v2353_v35 = vld [vmem:[%s3959_s0 + $0xe8] sm:$0xff]  }
  0x44   :  { %287 = vadd.xlane.f32.xlu0 %v286_v36  ;;  %v262_v36 = vsel %vm183_vm0, %v2251_v33, 0.0  ;;  %v2315_v38 = vunpack.c.l.bf16 %v2353_v35  ;;  %v2316_v48 = vunpack.c.h.bf16 %v2353_v35  ;;  %v460_v33 = vld [vmem:[%s3960_s1 + $0x98] sm:$0xff]  ;;  %v443_v35 = vld [vmem:[%s3960_s1 + $0x10] sm:$0xff] }
  0x47   :  { %245 = vadd.xlane.f32.xlu1 %v244_v40  ;;  %v2329_v40 = vld [vmem:[%s3959_s0 + $0x28] sm:$0xff]  }
  0x48   :  { %194 = vadd.xlane.f32.xlu0 %v193_v41  ;;  %v358_v41 = vsel %vm183_vm0, %v2315_v38, 0.0  ;;  %v2219_v44 = vunpack.c.l.bf16 %v2329_v40  ;;  %v2220_v54 = vunpack.c.h.bf16 %v2329_v40  ;;  %v2292_v40 = vunpack.c.h.bf16 %v2347_v23 }
  0x4a   :  { %v214_v47 = vsel %vm183_vm0, %v2219_v44, 0.0  ;;  %v217_v57 = vsel %vm183_vm0, %v2220_v54, 0.0  ;;  %v448_v54 = vld [vmem:[%s3960_s1 + $0x38] sm:$0xff] }
  0x4b   :  { %341 = vadd.xlane.f32.xlu1 %v340_v45  ;;  %v2345_v45 = vld [vmem:[%s3959_s0 + $0xa8] sm:$0xff]  }
  0x4c   :  { %290 = vadd.xlane.f32.xlu0 %v289_v46  ;;  %v265_v46 = vsel %vm183_vm0, %v2252_v43, 0.0  ;;  %v2283_v49 = vunpack.c.l.bf16 %v2345_v45  ;;  %v2284_v59 = vunpack.c.h.bf16 %v2345_v45  ;;  %v462_v43 = vld [vmem:[%s3960_s1 + $0xa8] sm:$0xff]  ;;  %v445_v45 = vld [vmem:[%s3960_s1 + $0x20] sm:$0xff] }
  0x4e   :  { %v310_v52 = vsel %vm183_vm0, %v2283_v49, 0.0  ;;  %v313_v62 = vsel %vm183_vm0, %v2284_v59, 0.0  ;;  %v449_v59 = vld [vmem:[%s3960_s1 + $0x40] sm:$0xff] }
  0x4f   :  { %248 = vadd.xlane.f32.xlu1 %v247_v50  ;;  %v2338_v50 = vld [vmem:[%s3959_s0 + $0x70] sm:$0xff]  }
  0x50   :  { %197 = vadd.xlane.f32.xlu0 %v196_v51  ;;  %v361_v51 = vsel %vm183_vm0, %v2316_v48, 0.0  ;;  %v2255_v53 = vunpack.c.l.bf16 %v2338_v50  ;;  %v2256_v63 = vunpack.c.h.bf16 %v2338_v50  ;;  %v325_v48 = vsel %vm183_vm0, %v2292_v40, 0.0  ;;  %v463_v50 = vld [vmem:[%s3960_s1 + $0xb0] sm:$0xff]  ;;  %v983_v40 = vld [vmem:[#allocation2 + $0x78] sm:$0xff] }
  0x53   :  { %344 = vadd.xlane.f32.xlu1 %v343_v55  ;;  %v2354_v55 = vld [vmem:[%s3959_s0 + $0xf0] sm:$0xff]  }
  0x54   :  { %293 = vadd.xlane.f32.xlu0 %v292_v56  ;;  %v268_v56 = vsel %vm183_vm0, %v2255_v53, 0.0  ;;  %v2319_v58 = vunpack.c.l.bf16 %v2354_v55  ;;  %v2320_v4 = vunpack.c.h.bf16 %v2354_v55  ;;  %v447_v53 = vld [vmem:[%s3960_s1 + $0x30] sm:$0xff] }
  0x55   :  { %v2440_v55 = vpack.c.bf16 %v448_v54, %v447_v53  ;;  %v984_v53 = vld [vmem:[#allocation2 + $0x80] sm:$0xff]  ;;  %v986_v54 = vld [vmem:[#allocation2 + $0x90] sm:$0xff] }
  0x57   :  { %251 = vadd.xlane.f32.xlu1 %v250_v60  ;;  %v2330_v60 = vld [vmem:[%s3959_s0 + $0x30] sm:$0xff]  }
  0x58   :  { %200 = vadd.xlane.f32.xlu0 %v199_v61  ;;  %v364_v61 = vsel %vm183_vm0, %v2319_v58, 0.0  ;;  %v2223_v0 = vunpack.c.l.bf16 %v2330_v60  ;;  %v2224_v10 = vunpack.c.h.bf16 %v2330_v60  ;;  %v450_v60 = vld [vmem:[%s3960_s1 + $0x48] sm:$0xff] }
  0x5a   :  { %v220_v3 = vsel %vm183_vm0, %v2223_v0, 0.0  ;;  %v223_v13 = vsel %vm183_vm0, %v2224_v10, 0.0  ;;  %v471_v10 = vld [vmem:[%s3960_s1 + $0xf0] sm:$0xff] }
  0x5b   :  { %347 = vadd.xlane.f32.xlu1 %v346_v1  ;;  %v2346_v1 = vld [vmem:[%s3959_s0 + $0xb0] sm:$0xff]  }
  0x5c   :  { %296 = vadd.xlane.f32.xlu0 %v295_v2  ;;  %v271_v2 = vsel %vm183_vm0, %v2256_v63, 0.0  ;;  %v2287_v5 = vunpack.c.l.bf16 %v2346_v1  ;;  %v2288_v15 = vunpack.c.h.bf16 %v2346_v1  ;;  %v468_v63 = vld [vmem:[%s3960_s1 + $0xd8] sm:$0xff]  ;;  %v451_v1 = vld [vmem:[%s3960_s1 + $0x50] sm:$0xff] }
  0x5e   :  { %v316_v8 = vsel %vm183_vm0, %v2287_v5, 0.0  ;;  %v319_v18 = vsel %vm183_vm0, %v2288_v15, 0.0  ;;  %v470_v5 = vld [vmem:[%s3960_s1 + $0xe8] sm:$0xff] }
  0x5f   :  { %254 = vadd.xlane.f32.xlu1 %v253_v6  ;;  %v2339_v6 = vld [vmem:[%s3959_s0 + $0x78] sm:$0xff]  }
  0x60   :  { %203 = vadd.xlane.f32.xlu0 %v202_v7  ;;  %v367_v7 = vsel %vm183_vm0, %v2320_v4, 0.0  ;;  %v2259_v9 = vunpack.c.l.bf16 %v2339_v6  ;;  %v2260_v19 = vunpack.c.h.bf16 %v2339_v6  ;;  %v469_v4 = vld [vmem:[%s3960_s1 + $0xe0] sm:$0xff] }
  0x61   :  { %v2450_v6 = vpack.c.bf16 %v470_v5, %v469_v4 }
  0x62   :  { %v277_v28 = vsel %vm183_vm0, %v2260_v19, 0.0  ;;  %v971_v19 = vld [vmem:[#allocation2 + $0x18] sm:$0xff] }
  0x63   :  { %350 = vadd.xlane.f32.xlu1 %v349_v11  ;;  %v2355_v11 = vld [vmem:[%s3959_s0 + $0xf8] sm:$0xff]  }
  0x64   :  { %299 = vadd.xlane.f32.xlu0 %v298_v12  ;;  %v274_v12 = vsel %vm183_vm0, %v2259_v9, 0.0  ;;  %v2323_v14 = vunpack.c.l.bf16 %v2355_v11  ;;  %v2324_v30 = vunpack.c.h.bf16 %v2355_v11  ;;  %v472_v11 = vld [vmem:[%s3960_s1 + $0xf8] sm:$0xff] }
  0x66   :  { %v373_v38 = vsel %vm183_vm0, %v2324_v30, 0.0  ;;  %v974_v30 = vld [vmem:[#allocation2 + $0x30] sm:$0xff] }
  0x67   :  { %257 = vadd.xlane.f32.xlu1 %v256_v16  ;;  %v2331_v16 = vld [vmem:[%s3959_s0 + $0x38] sm:$0xff]  }
  0x68   :  { %206 = vadd.xlane.f32.xlu0 %v205_v17  ;;  %v370_v17 = vsel %vm183_vm0, %v2323_v14, 0.0  ;;  %v2227_v20 = vunpack.c.l.bf16 %v2331_v16  ;;  %v456_v14 = vld [vmem:[%s3960_s1 + $0x78] sm:$0xff] }
  0x6a   :  { %v226_v29 = vsel %vm183_vm0, %v2227_v20, 0.0  ;;  %v968_v20 = vld [vmem:[#allocation2] sm:$0xff] }
  0x6b   :  { %353 = vadd.xlane.f32.xlu1 %v352_v21  ;;  %v457_v21 = vld [vmem:[%s3960_s1 + $0x80] sm:$0xff] }
  0x6c   :  { %302 = vadd.xlane.f32.xlu0 %v301_v22  ;;  %v458_v22 = vld [vmem:[%s3960_s1 + $0x88] sm:$0xff] }
  0x6d   :  { %v2426_v24 = vpack.c.bf16 %v458_v22, %v457_v21 }
  0x6f   :  { %260 = vadd.xlane.f32.xlu1 %v259_v26  ;;  %v442_v26 = vld [vmem:[%s3960_s1 + $0x8] sm:$0xff]  ;;  %2427 = vmatprep.subr.bf16.mxu0 %v2426_v24  ;;  %v970_v24 = vld [vmem:[#allocation2 + $0x10] sm:$0xff] }
  0x70   :  { %209 = vadd.xlane.f32.xlu0 %v208_v27  ;;  %v2428_v27 = vpack.c.bf16 %v442_v26, %v441_v25  ;;  %v973_v25 = vld [vmem:[#allocation2 + $0x28] sm:$0xff]  ;;  %v975_v26 = vld [vmem:[#allocation2 + $0x38] sm:$0xff] }
  0x72   :  { %2429 = vmatpush3.bf16.msra.mxu0 %v2428_v27  ;;  %v2460_v27 = vpack.c.bf16 %v970_v24, %v968_v20 }
  0x73   :  { %356 = vadd.xlane.f32.xlu1 %v355_v31  ;;  %v2291_v31 = vunpack.c.l.bf16 %v2347_v23 }
  0x74   :  { %305 = vadd.xlane.f32.xlu0 %v304_v32  ;;  %v459_v32 = vld [vmem:[%s3960_s1 + $0x90] sm:$0xff] }
  0x75   :  { %v2430_v34 = vpack.c.bf16 %v460_v33, %v459_v32  ;;  %v322_v39 = vsel %vm183_vm0, %v2291_v31, 0.0  ;;  %v977_v31 = vld [vmem:[#allocation2 + $0x48] sm:$0xff]  ;;  %v979_v32 = vld [vmem:[#allocation2 + $0x58] sm:$0xff] }
  0x77   :  { %263 = vadd.xlane.f32.xlu1 %v262_v36  ;;  %v444_v36 = vld [vmem:[%s3960_s1 + $0x18] sm:$0xff]  ;;  %2431 = vmatprep.subr.bf16.mxu0 %v2430_v34 }
  0x78   :  { %212 = vadd.xlane.f32.xlu0 %v211_v37  ;;  %v2432_v37 = vpack.c.bf16 %v444_v36, %v443_v35  ;;  %v2466_v36 = vpack.c.bf16 %v979_v32, %v977_v31 }
  0x7a   :  { %2433 = vmatpush3.bf16.msra.mxu0 %v2432_v37  ;;  %v976_v37 = vld [vmem:[#allocation2 + $0x40] sm:$0xff] }
  0x7b   :  { %359 = vadd.xlane.f32.xlu1 %v358_v41  ;;  %v2228_v41 = vunpack.c.h.bf16 %v2331_v16 }
  0x7c   :  { %308 = vadd.xlane.f32.xlu0 %v307_v42  ;;  %v461_v42 = vld [vmem:[%s3960_s1 + $0xa0] sm:$0xff] }
  0x7d   :  { %v2434_v44 = vpack.c.bf16 %v462_v43, %v461_v42  ;;  %v229_v49 = vsel %vm183_vm0, %v2228_v41, 0.0  ;;  %vm892_vm0 = vcmask 1041409  }
  0x7f   :  { %266 = vadd.xlane.f32.xlu1 %v265_v46  ;;  %v446_v46 = vld [vmem:[%s3960_s1 + $0x28] sm:$0xff]  ;;  %2435 = vmatprep.subr.bf16.mxu0 %v2434_v44 }
  0x80   :  { %215 = vadd.xlane.f32.xlu0 %v214_v47  ;;  %v2436_v47 = vpack.c.bf16 %v446_v46, %v445_v45  ;;  %v980_v45 = vld [vmem:[#allocation2 + $0x60] sm:$0xff]  ;;  %v982_v46 = vld [vmem:[#allocation2 + $0x70] sm:$0xff] }
  0x82   :  { %2437 = vmatpush3.bf16.msra.mxu0 %v2436_v47  ;;  %v985_v47 = vld [vmem:[#allocation2 + $0x88] sm:$0xff] }
  0x83   :  { %362 = vadd.xlane.f32.xlu1 %v361_v51  ;;  %v464_v51 = vld [vmem:[%s3960_s1 + $0xb8] sm:$0xff] }
  0x84   :  { %311 = vadd.xlane.f32.xlu0 %v310_v52  ;;  %v2438_v52 = vpack.c.bf16 %v464_v51, %v463_v50 }
  0x86   :  { %2439 = vmatprep.subr.bf16.mxu0 %v2438_v52 }
  0x87   :  { %269 = vadd.xlane.f32.xlu1 %v268_v56  ;;  %v465_v56 = vld [vmem:[%s3960_s1 + $0xc0] sm:$0xff]  ;;  %2441 = vmatpush3.bf16.msra.mxu0 %v2440_v55  ;;  %v989_v55 = vld [vmem:[#allocation2 + $0xa8] sm:$0xff] }
  0x88   :  { %218 = vadd.xlane.f32.xlu0 %v217_v57  ;;  %v466_v57 = vld [vmem:[%s3960_s1 + $0xc8] sm:$0xff] }
  0x89   :  { %v2442_v58 = vpack.c.bf16 %v466_v57, %v465_v56  ;;  %v991_v56 = vld [vmem:[#allocation2 + $0xb8] sm:$0xff]  ;;  %v2476_v57 = vpack.c.bf16 %v986_v54, %v984_v53 }
  0x8b   :  { %365 = vadd.xlane.f32.xlu1 %v364_v61  ;;  %v2444_v61 = vpack.c.bf16 %v450_v60, %v449_v59  ;;  %2443 = vmatprep.subr.bf16.mxu0 %v2442_v58  ;;  %v2478_v60 = vpack.c.bf16 %v991_v56, %v989_v55 }
  0x8c   :  { %314 = vadd.xlane.f32.xlu0 %v313_v62  ;;  %v467_v62 = vld [vmem:[%s3960_s1 + $0xd0] sm:$0xff] }
  0x8d   :  { %2445 = vmatpush3.bf16.msra.mxu0 %v2444_v61  ;;  %v2446_v0 = vpack.c.bf16 %v468_v63, %v467_v62  ;;  %v988_v61 = vld [vmem:[#allocation2 + $0xa0] sm:$0xff]  ;;  %v990_v62 = vld [vmem:[#allocation2 + $0xb0] sm:$0xff] }
  0x8e   :  { %v2480_v63 = vpack.c.bf16 %v990_v62, %v988_v61 }
  0x8f   :  { %272 = vadd.xlane.f32.xlu1 %v271_v2  ;;  %v452_v2 = vld [vmem:[%s3960_s1 + $0x58] sm:$0xff]  ;;  %2447 = vmatprep.subr.bf16.mxu0 %v2446_v0 }
  0x90   :  { %221 = vadd.xlane.f32.xlu0 %v220_v3  ;;  %v2448_v3 = vpack.c.bf16 %v452_v2, %v451_v1 }
  0x92   :  { %2449 = vmatpush3.bf16.msra.mxu0 %v2448_v3 }
  0x93   :  { %368 = vadd.xlane.f32.xlu1 %v367_v7  ;;  %v453_v7 = vld [vmem:[%s3960_s1 + $0x60] sm:$0xff]  ;;  %2451 = vmatprep.subr.bf16.mxu0 %v2450_v6 }
  0x94   :  { %317 = vadd.xlane.f32.xlu0 %v316_v8  ;;  %v454_v8 = vld [vmem:[%s3960_s1 + $0x68] sm:$0xff] }
  0x95   :  { %v2452_v9 = vpack.c.bf16 %v454_v8, %v453_v7 }
  0x97   :  { %275 = vadd.xlane.f32.xlu1 %v274_v12  ;;  %2453 = vmatpush3.bf16.msra.mxu0 %v2452_v9  ;;  %v2454_v12 = vpack.c.bf16 %v472_v11, %v471_v10 }
  0x98   :  { %224 = vadd.xlane.f32.xlu0 %v223_v13  ;;  %v455_v13 = vld [vmem:[%s3960_s1 + $0x70] sm:$0xff] }
  0x99   :  { %v2456_v15 = vpack.c.bf16 %v456_v14, %v455_v13  ;;  %2455 = vmatprep.subr.bf16.mxu0 %v2454_v12 }
  0x9b   :  { %371 = vadd.xlane.f32.xlu1 %v370_v17  ;;  %2457 = vmatpush3.bf16.msra.mxu0 %v2456_v15 }
  0x9c   :  { %320 = vadd.xlane.f32.xlu0 %v319_v18  ;;  %v969_v18 = vld [vmem:[#allocation2 + $0x8] sm:$0xff] }
  0x9d   :  { %v2458_v23 = vpack.c.bf16 %v971_v19, %v969_v18 }
  0x9f   :  { %278 = vadd.xlane.f32.xlu1 %v277_v28  ;;  %v2462_v28 = vpack.c.bf16 %v975_v26, %v973_v25  ;;  %2459 = vmatprep.subr.bf16.mxu1 %v2458_v23  ;;  %v544_v26 = vlaneseq }
  0xa0   :  { %227 = vadd.xlane.f32.xlu0 %v226_v29  ;;  %v972_v29 = vld [vmem:[#allocation2 + $0x20] sm:$0xff]  ;;  %2461 = vmatpush1.bf16.msra.mxu1 %v2460_v27 }
  0xa1   :  { %v2464_v33 = vpack.c.bf16 %v974_v30, %v972_v29  ;;  %2463 = vmatprep.subr.bf16.mxu1 %v2462_v28  ;;  %v545_v29 = vand.u32 127, %v544_v26  ;;  %v3174_v30 = vshrl.u32 %v544_v26, 7 }
  0xa3   :  { %374 = vadd.xlane.f32.xlu1 %v373_v38  ;;  %v978_v38 = vld [vmem:[#allocation2 + $0x50] sm:$0xff]  ;;  %v550_v31 = vadd.s32 4294967288, %v545_v29  ;;  %v557_v32 = vadd.s32 4294967280, %v545_v29  ;;  %v620_v55 = vadd.s32 4294967208, %v545_v29  ;;  %v627_v56 = vadd.s32 4294967200, %v545_v29 }
  0xa4   :  { %323 = vadd.xlane.f32.xlu0 %v322_v39  ;;  %v981_v39 = vld [vmem:[#allocation2 + $0x68] sm:$0xff]  ;;  %2465 = vmatpush1.bf16.msra.mxu1 %v2464_v33  ;;  %v2468_v41 = vpack.c.bf16 %v978_v38, %v976_v37  ;;  %v564_v37 = vadd.s32 4294967272, %v545_v29  ;;  %v571_v38 = vadd.s32 4294967264, %v545_v29 }
  0xa5   :  { %2467 = vmatprep.subr.bf16.mxu1 %v2466_v36  ;;  %v2470_v44 = vpack.c.bf16 %v983_v40, %v981_v39  ;;  %v578_v39 = vadd.s32 4294967256, %v545_v29  ;;  %v585_v40 = vadd.s32 4294967248, %v545_v29 }
  0xa6   :  { %v3194_v54 = vsub.s32 %v564_v37, %v3174_v30  ;;  %v641_v37 = vadd.s32 4294967184, %v545_v29 }
  0xa7   :  { %326 = vadd.xlane.f32.xlu1 %v325_v48  ;;  %v987_v48 = vld [vmem:[#allocation2 + $0x98] sm:$0xff]  ;;  %v3200_v61 = vsub.s32 %v578_v39, %v3174_v30  ;;  %v3203_v62 = vsub.s32 %v585_v40, %v3174_v30 }
  0xa8   :  { %230 = vadd.xlane.f32.xlu0 %v229_v49  ;;  %2469 = vmatpush1.bf16.msra.mxu1 %v2468_v41  ;;  %v2472_v49 = vpack.c.bf16 %v982_v46, %v980_v45  ;;  %v2474_v52 = vpack.c.bf16 %v987_v48, %v985_v47  ;;  %v592_v41 = vadd.s32 4294967240, %v545_v29  ;;  %v606_v45 = vadd.s32 4294967224, %v545_v29  ;;  %4045 = vst [vmem:[#allocation15_spill] sm:$0xff] %v3194_v54 }
  0xa9   :  { %2471 = vmatprep.subr.bf16.mxu1 %v2470_v44  ;;  %v599_v44 = vadd.s32 4294967232, %v545_v29  ;;  %v3181_v46 = vsub.s32 %v545_v29, %v3174_v30  ;;  %v3184_v47 = vsub.s32 %v550_v31, %v3174_v30  ;;  %v3187_v48 = vsub.s32 %v557_v32, %v3174_v30  ;;  %4047 = vst [vmem:[#allocation17_spill] sm:$0xff] %v3200_v61 }
  0xaa   :  { %4048 = vst [vmem:[#allocation18_spill] sm:$0xff] %v3203_v62  ;;  %v3215_v32 = vsub.s32 %v606_v45, %v3174_v30 }
  0xab   :  { %4041 = vst [vmem:[#allocation11_spill] sm:$0xff] %v3181_v46  ;;  %4042 = vst [vmem:[#allocation12_spill] sm:$0xff] %v3184_v47  ;;  %v3212_v31 = vsub.s32 %v599_v44, %v3174_v30 }
  0xac   :  { %2473 = vmatpush1.bf16.msra.mxu1 %v2472_v49  ;;  %4043 = vst [vmem:[#allocation13_spill] sm:$0xff] %v3187_v48  ;;  %v613_v49 = vadd.s32 4294967216, %v545_v29  ;;  %4052 = vst [vmem:[#allocation22_spill] sm:$0xff] %v3215_v32 }
  0xad   :  { %2475 = vmatprep.subr.bf16.mxu1 %v2474_v52  ;;  %4051 = vst [vmem:[#allocation21_spill] sm:$0xff] %v3212_v31 }
  0xb0   :  { %2477 = vmatpush1.bf16.msra.mxu1 %v2476_v57  ;;  %v634_v57 = vadd.s32 4294967192, %v545_v29 }
  0xb1   :  { %2479 = vmatprep.subr.bf16.mxu1 %v2478_v60  ;;  %v3197_v60 = vsub.s32 %v571_v38, %v3174_v30 }
  0xb3   :  { %4046 = vst [vmem:[#allocation16_spill] sm:$0xff] %v3197_v60 }
  0xb4   :  { %2481 = vmatpush1.bf16.msra.mxu1 %v2480_v63  ;;  %v3206_v63 = vsub.s32 %v592_v41, %v3174_v30 }
  0xb6   :  { %4049 = vst [vmem:[#allocation19_spill] sm:$0xff] %v3206_v63 }
  0xb8   :  { %v3102_v16 = vpop.xlane.xlu1 %329 }
  0xb9   :  { %v3104_v17 = vpop.xlane.xlu0 %233  ;;  %v3234_v45 = vmul.f32 0.015625, %v3102_v16  ;;  %v648_v16 = vadd.s32 4294967176, %v545_v29 }
  0xbb   :  { %4057 = vst [vmem:[#allocation27_spill] sm:$0xff] %v3234_v45 }
  0xbc   :  { %v3106_v21 = vpop.xlane.xlu1 %332 }
  0xbd   :  { %v3108_v22 = vpop.xlane.xlu0 %236  ;;  %v3209_v26 = vmul.f32 0.015625, %v3106_v21  ;;  %v3227_v21 = vsub.s32 %v613_v49, %v3174_v30 }
  0xbe   :  { %v3218_v38 = vmul.f32 0.015625, %v3108_v22  ;;  %v3237_v22 = vsub.s32 %v620_v55, %v3174_v30 }
  0xbf   :  { %4050 = vst [vmem:[#allocation20_spill] sm:$0xff] %v3209_v26  ;;  %4056 = vst [vmem:[#allocation26_spill] sm:$0xff] %v3227_v21  ;;  %v820_v55 = vrot.slane %v3209_v26, %v3184_v47 }
  0xc0   :  { %v3110_v34 = vpop.xlane.xlu1 %188  ;;  %4053 = vst [vmem:[#allocation23_spill] sm:$0xff] %v3218_v38  ;;  %4058 = vst [vmem:[#allocation28_spill] sm:$0xff] %v3237_v22 }
  0xc1   :  { %v3112_v35 = vpop.xlane.xlu0 %185  ;;  %v3221_v39 = vmul.f32 0.015625, %v3110_v34  ;;  %v3240_v34 = vsub.s32 %v627_v56, %v3174_v30 }
  0xc2   :  { %v3224_v40 = vmul.f32 0.015625, %v3112_v35  ;;  %v3243_v35 = vsub.s32 %v634_v57, %v3174_v30  ;;  %v3263_v57 = vsub.s32 %v641_v37, %v3174_v30  ;;  %v816_v37 = vrot.slane %v3234_v45, %v3181_v46 }
  0xc3   :  { %4054 = vst [vmem:[#allocation24_spill] sm:$0xff] %v3221_v39  ;;  %4059 = vst [vmem:[#allocation29_spill] sm:$0xff] %v3240_v34  ;;  %v3296_v45 = vsub.s32 %v648_v16, %v3174_v30 }
  0xc4   :  { %v3114_v42 = vpop.xlane.xlu1 %281  ;;  %4055 = vst [vmem:[#allocation25_spill] sm:$0xff] %v3224_v40  ;;  %4060 = vst [vmem:[#allocation30_spill] sm:$0xff] %v3243_v35 }
  0xc5   :  { %v3116_v43 = vpop.xlane.xlu0 %239  ;;  %4065 = vst [vmem:[#allocation35_spill] sm:$0xff] %v3263_v57  ;;  %v3281_v26 = vmul.f32 0.015625, %v3114_v42  ;;  %4067 = vst [vmem:[#allocation37_spill] sm:$0xff] %v3296_v45  ;;  %v821_v42 = vsel %vm555_vm1, %v820_v55, %v816_v37 }
  0xc6   :  { %v3249_v49 = vmul.f32 0.015625, %v3116_v43  ;;  %v554_v43 = vrot.slane %v3221_v39, %v3184_v47 }
  0xc8   :  { %v3118_v50 = vpop.xlane.xlu1 %335  ;;  %4062 = vst [vmem:[#allocation32_spill] sm:$0xff] %v3249_v49 }
  0xc9   :  { %v3120_v51 = vpop.xlane.xlu0 %284  ;;  %v3252_v21 = vmul.f32 0.015625, %v3118_v50  ;;  %v549_v50 = vrot.slane %v3224_v40, %v3181_v46  ;;  %v667_v40 = vrot.slane %v3249_v49, %v3187_v48 }
  0xca   :  { %v3257_v22 = vmul.f32 0.015625, %v3120_v51 }
  0xcb   :  { %4063 = vst [vmem:[#allocation33_spill] sm:$0xff] %v3252_v21  ;;  %v825_v57 = vrot.slane %v3252_v21, %v3187_v48 }
  0xcc   :  { %v3122_v58 = vpop.xlane.xlu1 %242  ;;  %4064 = vst [vmem:[#allocation34_spill] sm:$0xff] %v3257_v22 }
  0xcd   :  { %v3124_v59 = vpop.xlane.xlu0 %191  ;;  %v3260_v56 = vmul.f32 0.015625, %v3122_v58 }
  0xce   :  { %v3272_v29 = vmul.f32 0.015625, %v3124_v59 }
  0xd0   :  { %v3126_v0 = vpop.xlane.xlu1 %338  ;;  %v561_v16 = vrot.slane %v3272_v29, %v3187_v48 }
  0xd1   :  { %v3128_v1 = vpop.xlane.xlu0 %287 }
  0xd2   :  { %v3287_v39 = vmul.f32 0.015625, %v3128_v1  ;;  %v672_v1 = vrot.slane %v3260_v56, %v3194_v54 }
  0xd4   :  { %v3130_v2 = vpop.xlane.xlu1 %245 }
  0xd5   :  { %v3132_v3 = vpop.xlane.xlu0 %194  ;;  %v3304_v35 = vmul.f32 0.015625, %v3130_v2 }
  0xd6   :  { %v3311_v21 = vmul.f32 0.015625, %v3132_v3  ;;  %v826_v3 = vsel %vm562_vm2, %v825_v57, %v821_v42 }
  0xd8   :  { %v3134_v4 = vpop.xlane.xlu1 %341 }
  0xd9   :  { %v3136_v5 = vpop.xlane.xlu0 %290 }
  0xdc   :  { %v3138_v6 = vpop.xlane.xlu1 %248 }
  0xdd   :  { %v3140_v7 = vpop.xlane.xlu0 %197 }
  0xe0   :  { %v3142_v8 = vpop.xlane.xlu1 %344 }
  0xe1   :  { %v3144_v9 = vpop.xlane.xlu0 %293 }
  0xe4   :  { %v3146_v10 = vpop.xlane.xlu1 %251 }
  0xe5   :  { %v3148_v11 = vpop.xlane.xlu0 %200 }
  0xe8   :  { %v3150_v12 = vpop.xlane.xlu1 %347 }
  0xe9   :  { %v3152_v13 = vpop.xlane.xlu0 %296 }
  0xec   :  { %v3154_v14 = vpop.xlane.xlu1 %254 }
  0xed   :  { %v3156_v15 = vpop.xlane.xlu0 %203 }
  0xf0   :  { %v3158_v18 = vpop.xlane.xlu1 %350 }
  0xf1   :  { %v3160_v19 = vpop.xlane.xlu0 %299 }
  0xf4   :  { %v3162_v20 = vpop.xlane.xlu1 %257 }
  0xf5   :  { %v3164_v23 = vpop.xlane.xlu0 %206 }
  0xf8   :  { %v3166_v24 = vpop.xlane.xlu1 %353 }
  0xf9   :  { %v3168_v25 = vpop.xlane.xlu0 %302 }
  0xfc   :  { %v3170_v27 = vpop.xlane.xlu1 %260 }
  0xfd   :  { %v3172_v28 = vpop.xlane.xlu0 %209 }
 0x100   :  { %v3176_v33 = vpop.xlane.xlu1 %356 }
 0x101   :  { %v3178_v36 = vpop.xlane.xlu0 %305 }
 0x104   :  { %v3189_v52 = vpop.xlane.xlu1 %263 }
 0x105   :  { %v3191_v53 = vpop.xlane.xlu0 %212 }
 0x106   :  { %4044 = vst [vmem:[#allocation14_spill] sm:$0xff] %v3191_v53  ;;  %v3246_v53 = vmul.f32 0.015625, %v3104_v17  ;;  %v662_v17 = vrot.slane %v3218_v38, %v3184_v47  ;;  %v3284_v38 = vmul.f32 0.015625, %v3126_v0  ;;  %v741_v0 = vrot.slane %v3257_v22, %v3184_v47 }
 0x107   :  { %v737_v47 = vrot.slane %v3281_v26, %v3181_v46  ;;  %v3332_v22 = vmul.f32 0.015625, %v3138_v6  ;;  %v3348_v6 = vmul.f32 0.015625, %v3144_v9 }
 0x108   :  { %v3229_v41 = vpop.xlane.xlu1 %359  ;;  %4061 = vst [vmem:[#allocation31_spill] sm:$0xff] %v3246_v53  ;;  %4066 = vst [vmem:[#allocation36_spill] sm:$0xff] %v3284_v38  ;;  %v658_v59 = vrot.slane %v3246_v53, %v3181_v46  ;;  %v556_v53 = vsel %vm555_vm1, %v554_v43, %v549_v50  ;;  %v830_v2 = vrot.slane %v3284_v38, %v3194_v54  ;;  %v3324_v43 = vmul.f32 0.015625, %v3134_v4 }
 0x109   :  { %v3231_v44 = vpop.xlane.xlu0 %308  ;;  %v742_v46 = vsel %vm555_vm1, %v741_v0, %v737_v47  ;;  %v3339_v4 = vmul.f32 0.015625, %v3140_v7  ;;  %4068 = vst [vmem:[#allocation38_spill] sm:$0xff] %v3348_v6  ;;  %v3359_v0 = vmul.f32 0.015625, %v3146_v10  ;;  %v682_v9 = vrot.slane %v3332_v22, %v3200_v61 }
 0x10a   :  { %v663_v49 = vsel %vm555_vm1, %v662_v17, %v658_v59  ;;  %v746_v17 = vrot.slane %v3287_v39, %v3187_v48  ;;  %v3329_v59 = vmul.f32 0.015625, %v3136_v5  ;;  %v677_v48 = vrot.slane %v3304_v35, %v3197_v60 }
 0x10b   :  { %v668_v50 = vsel %vm562_vm2, %v667_v40, %v663_v49  ;;  %v563_v40 = vsel %vm562_vm2, %v561_v16, %v556_v53  ;;  %v568_v5 = vrot.slane %v3311_v21, %v3194_v54  ;;  %v3345_v49 = vmul.f32 0.015625, %v3142_v8 }
 0x10c   :  { %v3274_v51 = vpop.xlane.xlu1 %266  ;;  %v673_v38 = vsel %vm569_vm3, %v672_v1, %v668_v50  ;;  %v831_v42 = vsel %vm569_vm3, %v830_v2, %v826_v3  ;;  %v747_v7 = vsel %vm562_vm2, %v746_v17, %v742_v46  ;;  %v835_v53 = vrot.slane %v3324_v43, %v3197_v60 }
 0x10d   :  { %v3276_v58 = vpop.xlane.xlu0 %215  ;;  %v751_v8 = vrot.slane %v3329_v59, %v3194_v54  ;;  %v3366_v1 = vmul.f32 0.015625, %v3148_v11  ;;  %v3369_v16 = vmul.f32 0.015625, %v3150_v12  ;;  %v678_v46 = vsel %vm576_vm4, %v677_v48, %v673_v38 }
 0x10e   :  { %v575_v2 = vrot.slane %v3339_v4, %v3197_v60  ;;  %v3375_v10 = vmul.f32 0.015625, %v3152_v13  ;;  %v3378_v17 = vmul.f32 0.015625, %v3154_v14  ;;  %v570_v50 = vsel %vm569_vm3, %v568_v5, %v563_v40 }
 0x10f   :  { %4069 = vst [vmem:[#allocation39_spill] sm:$0xff] %v3369_v16  ;;  %v840_v11 = vrot.slane %v3345_v49, %v3200_v61  ;;  %v756_v12 = vrot.slane %v3348_v6, %v3197_v60  ;;  %v3386_v3 = vmul.f32 0.015625, %v3156_v15  ;;  %v836_v13 = vsel %vm576_vm4, %v835_v53, %v831_v42 }
 0x110   :  { %v3313_v55 = vpop.xlane.xlu1 %362  ;;  %v687_v14 = vrot.slane %v3359_v0, %v3203_v62  ;;  %v3396_v40 = vmul.f32 0.015625, %v3158_v18  ;;  %v3399_v5 = vmul.f32 0.015625, %v3160_v19  ;;  %v752_v60 = vsel %vm569_vm3, %v751_v8, %v747_v7 }
 0x111   :  { %v3315_v37 = vpop.xlane.xlu0 %311  ;;  %v683_v15 = vsel %vm583_vm5, %v682_v9, %v678_v46  ;;  %v582_v54 = vrot.slane %v3366_v1, %v3200_v61  ;;  %v845_v6 = vrot.slane %v3369_v16, %v3203_v62  ;;  %v577_v42 = vsel %vm576_vm4, %v575_v2, %v570_v50 }
 0x112   :  { %v761_v53 = vrot.slane %v3375_v10, %v3200_v61  ;;  %v692_v18 = vrot.slane %v3378_v17, %v3206_v63  ;;  %v3413_v19 = vmul.f32 0.015625, %v3162_v20  ;;  %v841_v7 = vsel %vm583_vm5, %v840_v11, %v836_v13 }
 0x113   :  { %v757_v8 = vsel %vm576_vm4, %v756_v12, %v752_v60  ;;  %v589_v9 = vrot.slane %v3386_v3, %v3203_v62  ;;  %v3420_v46 = vmul.f32 0.015625, %v3164_v23  ;;  %v688_v61 = vsel %vm590_vm6, %v687_v14, %v683_v15 }
 0x114   :  { %v3350_v47 = vpop.xlane.xlu1 %269  ;;  %v850_v20 = vrot.slane %v3396_v40, %v3206_v63  ;;  %v766_v11 = vrot.slane %v3399_v5, %v3203_v62  ;;  %v3432_v60 = vmul.f32 0.015625, %v3166_v24  ;;  %v584_v12 = vsel %vm583_vm5, %v582_v54, %v577_v42 }
 0x115   :  { %v3352_v57 = vpop.xlane.xlu0 %218  ;;  %v846_v23 = vsel %vm590_vm6, %v845_v6, %v841_v7  ;;  %v3437_v13 = vmul.f32 0.015625, %v3168_v25  ;;  %v3440_v16 = vmul.f32 0.015625, %v3170_v27  ;;  %v762_v14 = vsel %vm583_vm5, %v761_v53, %v757_v8  ;;  %v4075_v8 = vld [vmem:[#allocation14_spill] sm:$0xff] }
 0x116   :  { %4070 = vst [vmem:[#allocation40_spill] sm:$0xff] %v3432_v60  ;;  %v693_v15 = vsel %vm597_vm7, %v692_v18, %v688_v61  ;;  %v697_v62 = vrot.slane %v3413_v19, %v3212_v31  ;;  %v3447_v24 = vmul.f32 0.015625, %v3172_v28  ;;  %v591_v54 = vsel %vm590_vm6, %v589_v9, %v584_v12 }
 0x117   :  { %4071 = vst [vmem:[#allocation41_spill] sm:$0xff] %v3437_v13  ;;  %v596_v25 = vrot.slane %v3420_v46, %v3206_v63  ;;  %v3453_v6 = vmul.f32 0.015625, %v3176_v33  ;;  %v3456_v27 = vmul.f32 0.015625, %v3178_v36  ;;  %v851_v53 = vsel %vm597_vm7, %v850_v20, %v846_v23 }
 0x118   :  { %v3388_v48 = vpop.xlane.xlu1 %365  ;;  %v767_v28 = vsel %vm590_vm6, %v766_v11, %v762_v14  ;;  %v855_v18 = vrot.slane %v3432_v60, %v3212_v31  ;;  %v3465_v7 = vmul.f32 0.015625, %v3189_v52  ;;  %v771_v33 = vrot.slane %v3437_v13, %v3206_v63  ;;  %v4081_v60 = vld [vmem:[#allocation26_spill] sm:$0xff] }
 0x119   :  { %v3390_v38 = vpop.xlane.xlu0 %314  ;;  %4072 = vst [vmem:[#allocation42_spill] sm:$0xff] %v3453_v6  ;;  %4073 = vst [vmem:[#allocation43_spill] sm:$0xff] %v3456_v27  ;;  %v702_v36 = vrot.slane %v3440_v16, %v3215_v32  ;;  %v3472_v9 = vmul.f32 0.015625, %v4075_v8  ;;  %v3475_v12 = vmul.f32 0.015625, %v3229_v41  ;;  %v698_v20 = vsel %vm604_vm8, %v697_v62, %v693_v15 }
 0x11a   :  { %4074 = vst [vmem:[#allocation44_spill] sm:$0xff] %v3465_v7  ;;  %v603_v11 = vrot.slane %v3447_v24, %v3212_v31  ;;  %v3481_v52 = vmul.f32 0.015625, %v3231_v44  ;;  %v3484_v23 = vmul.f32 0.015625, %v3274_v51  ;;  %v598_v14 = vsel %vm597_vm7, %v596_v25, %v591_v54 }
 0x11b   :  { %4076 = vst [vmem:[#allocation14_spill] sm:$0xff] %v3472_v9  ;;  %4077 = vst [vmem:[#allocation45_spill] sm:$0xff] %v3475_v12  ;;  %v860_v8 = vrot.slane %v3453_v6, %v3215_v32  ;;  %v776_v41 = vrot.slane %v3456_v27, %v3212_v31  ;;  %v3492_v63 = vmul.f32 0.015625, %v3276_v58  ;;  %v856_v44 = vsel %vm604_vm8, %v855_v18, %v851_v53 }
 0x11c   :  { %v3422_v2 = vpop.xlane.xlu1 %272  ;;  %4078 = vst [vmem:[#allocation46_spill] sm:$0xff] %v3481_v52  ;;  %4079 = vst [vmem:[#allocation47_spill] sm:$0xff] %v3484_v23  ;;  %v707_v51 = vrot.slane %v3465_v7, %v4081_v60  ;;  %v3498_v13 = vmul.f32 0.015625, %v3313_v55  ;;  %v3501_v54 = vmul.f32 0.015625, %v3315_v37  ;;  %v772_v25 = vsel %vm597_vm7, %v771_v33, %v767_v28  ;;  %v4084_v55 = vld [vmem:[#allocation28_spill] sm:$0xff] }
 0x11d   :  { %v3424_v50 = vpop.xlane.xlu0 %221  ;;  %4080 = vst [vmem:[#allocation48_spill] sm:$0xff] %v3492_v63  ;;  %v703_v31 = vsel %vm611_vm9, %v702_v36, %v698_v20  ;;  %v610_v58 = vrot.slane %v3472_v9, %v3215_v32  ;;  %v865_v27 = vrot.slane %v3475_v12, %v4081_v60  ;;  %v605_v53 = vsel %vm604_vm8, %v603_v11, %v598_v14 }
 0x11e   :  { %4082 = vst [vmem:[#allocation49_spill] sm:$0xff] %v3498_v13  ;;  %4083 = vst [vmem:[#allocation50_spill] sm:$0xff] %v3501_v54  ;;  %v781_v18 = vrot.slane %v3481_v52, %v3215_v32  ;;  %v712_v7 = vrot.slane %v3484_v23, %v4084_v55  ;;  %v3515_v37 = vmul.f32 0.015625, %v3350_v47  ;;  %v861_v28 = vsel %vm611_vm9, %v860_v8, %v856_v44  ;;  %v4123_v23 = vld [vmem:[#allocation27_spill] sm:$0xff] }
 0x11f   :  { %v777_v33 = vsel %vm604_vm8, %v776_v41, %v772_v25  ;;  %v617_v36 = vrot.slane %v3492_v63, %v4081_v60  ;;  %v3522_v20 = vmul.f32 0.015625, %v3352_v57  ;;  %v708_v32 = vsel %vm618_vm10, %v707_v51, %v703_v31 }
 0x120   :  { %v369_v42 = vpop.xlane.xlu1 %368  ;;  %4085 = vst [vmem:[#allocation51_spill] sm:$0xff] %v3515_v37  ;;  %v870_v12 = vrot.slane %v3498_v13, %v4084_v55  ;;  %v786_v47 = vrot.slane %v3501_v54, %v4081_v60  ;;  %v3530_v8 = vmul.f32 0.015625, %v3388_v48  ;;  %v612_v41 = vsel %vm611_vm9, %v610_v58, %v605_v53  ;;  %v4121_v13 = vld [vmem:[#allocation23_spill] sm:$0xff] }
 0x121   :  { %v3458_v61 = vpop.xlane.xlu0 %317  ;;  %4086 = vst [vmem:[#allocation52_spill] sm:$0xff] %v3522_v20  ;;  %v866_v44 = vsel %vm618_vm10, %v865_v27, %v861_v28  ;;  %v3535_v57 = vmul.f32 0.015625, %v3390_v38  ;;  %v3538_v25 = vmul.f32 0.015625, %v3422_v2  ;;  %v782_v31 = vsel %vm611_vm9, %v781_v18, %v777_v33 }
 0x122   :  { %4087 = vst [vmem:[#allocation53_spill] sm:$0xff] %v3530_v8  ;;  %v713_v51 = vsel %vm625_vm11, %v712_v7, %v708_v32  ;;  %v717_v48 = vrot.slane %v3515_v37, %v3240_v34  ;;  %v3544_v60 = vmul.f32 0.015625, %v369_v42  ;;  %v619_v58 = vsel %vm618_vm10, %v617_v36, %v612_v41  ;;  %v4094_v36 = vld [vmem:[#allocation30_spill] sm:$0xff]  ;;  %v4120_v37 = vld [vmem:[#allocation31_spill] sm:$0xff] }
 0x123   :  { %4088 = vst [vmem:[#allocation54_spill] sm:$0xff] %v3535_v57  ;;  %4089 = vst [vmem:[#allocation55_spill] sm:$0xff] %v3538_v25  ;;  %v624_v38 = vrot.slane %v3522_v20, %v4084_v55  ;;  %v871_v18 = vsel %vm625_vm11, %v870_v12, %v866_v44  ;;  %v787_v32 = vsel %vm618_vm10, %v786_v47, %v782_v31  ;;  %v3567_v41 = vmul.f32 0.015625, %v3458_v61 }
 0x124   :  { %v276_v62 = vpop.xlane.xlu1 %275  ;;  %4090 = vst [vmem:[#allocation56_spill] sm:$0xff] %v3544_v60  ;;  %v875_v42 = vrot.slane %v3530_v8, %v3240_v34  ;;  %v791_v33 = vrot.slane %v3535_v57, %v4084_v55  ;;  %v718_v12 = vsel %vm632_vm12, %v717_v48, %v713_v51  ;;  %v880_v47 = vrot.slane %v3544_v60, %v4094_v36  ;;  %v4099_v55 = vld [vmem:[#allocation35_spill] sm:$0xff] }
 0x125   :  { %v225_v15 = vpop.xlane.xlu0 %224  ;;  %v3549_v27 = vmul.f32 0.015625, %v276_v62  ;;  %v722_v62 = vrot.slane %v3538_v25, %v4094_v36  ;;  %4096 = vst [vmem:[#allocation61_spill] sm:$0xff] %v3567_v41 }
 0x126   :  { %v3572_v44 = vmul.f32 0.015625, %v225_v15  ;;  %v876_v51 = vsel %vm632_vm12, %v875_v42, %v871_v18 }
 0x127   :  { %4091 = vst [vmem:[#allocation57_spill] sm:$0xff] %v3549_v27  ;;  %v727_v57 = vrot.slane %v3549_v27, %v4099_v55 }
 0x128   :  { %v372_v11 = vpop.xlane.xlu1 %371  ;;  %4097 = vst [vmem:[#allocation62_spill] sm:$0xff] %v3572_v44  ;;  %v638_v18 = vrot.slane %v3572_v44, %v4094_v36 }
 0x129   :  { %v321_v14 = vpop.xlane.xlu0 %320  ;;  %v3551_v2 = vmul.f32 0.015625, %v372_v11  ;;  %v3564_v11 = vmul.f32 0.015625, %v3424_v50 }
 0x12a   :  { %v3574_v31 = vmul.f32 0.015625, %v321_v14 }
 0x12b   :  { %4092 = vst [vmem:[#allocation58_spill] sm:$0xff] %v3551_v2  ;;  %4095 = vst [vmem:[#allocation60_spill] sm:$0xff] %v3564_v11  ;;  %v885_v50 = vrot.slane %v3551_v2, %v4099_v55  ;;  %v723_v2 = vsel %vm639_vm13, %v722_v62, %v718_v12 }
 0x12c   :  { %v279_v53 = vpop.xlane.xlu1 %278  ;;  %4098 = vst [vmem:[#allocation63_spill] sm:$0xff] %v3574_v31  ;;  %v801_v42 = vrot.slane %v3574_v31, %v4094_v36  ;;  %v728_v62 = vsel %vm646_vm14, %v727_v57, %v723_v2 }
 0x12d   :  { %v228_v28 = vpop.xlane.xlu0 %227  ;;  %v3557_v7 = vmul.f32 0.015625, %v279_v53  ;;  %v626_v53 = vsel %vm625_vm11, %v624_v38, %v619_v58  ;;  %v792_v58 = vsel %vm625_vm11, %v791_v33, %v787_v32  ;;  %v631_v38 = vrot.slane %v3564_v11, %v3240_v34 }
 0x12e   :  { %v3581_v25 = vmul.f32 0.015625, %v228_v28  ;;  %v796_v28 = vrot.slane %v3567_v41, %v3240_v34 }
 0x12f   :  { %4093 = vst [vmem:[#allocation59_spill] sm:$0xff] %v3557_v7  ;;  %v732_v15 = vrot.slane %v3557_v7, %v3296_v45 }
 0x130   :  { %4100 = vst [vmem:[#allocation64_spill] sm:$0xff] %v3581_v25  ;;  %v375_v61 = vpop.xlane.xlu1 %374  ;;  %v645_v32 = vrot.slane %v3581_v25, %v4099_v55  ;;  %v797_v25 = vsel %vm632_vm12, %v796_v28, %v792_v58  ;;  %v993_v58 = vld [vmem:[#allocation2 + $0xc8] sm:$0xff]  ;;  %v992_v28 = vld [vmem:[#allocation2 + $0xc0] sm:$0xff] }
 0x131   :  { %v324_v8 = vpop.xlane.xlu0 %323  ;;  %v3586_v48 = vmul.f32 0.015625, %v375_v61  ;;  %v881_v61 = vsel %vm639_vm13, %v880_v47, %v876_v51  ;;  %v633_v51 = vsel %vm632_vm12, %v631_v38, %v626_v53  ;;  %v802_v57 = vsel %vm639_vm13, %v801_v42, %v797_v25  ;;  %v995_v25 = vld [vmem:[#allocation2 + $0xd8] sm:$0xff] }
 0x132   :  { %v3588_v14 = vmul.f32 0.015625, %v324_v8  ;;  %v886_v12 = vsel %vm646_vm14, %v885_v50, %v881_v61  ;;  %v2482_v38 = vpack.c.bf16 %v995_v25, %v993_v58  ;;  %v996_v61 = vld [vmem:[#allocation2 + $0xe0] sm:$0xff] }
 0x133   :  { %4101 = vst [vmem:[#allocation65_spill] sm:$0xff] %v3586_v48  ;;  %v890_v8 = vrot.slane %v3586_v48, %v3296_v45  ;;  %v733_v48 = vsel %vm653_vm15, %v732_v15, %v728_v62  ;;  %v2779_v62 = vmov 0.0  }
 0x134   :  { %4102 = vst [vmem:[#allocation66_spill] sm:$0xff] %v3588_v14  ;;  %v806_v33 = vrot.slane %v3588_v14, %v4099_v55  ;;  %v327_v34 = vpop.xlane.xlu1 %326  ;;  %v640_v14 = vsel %vm639_vm13, %v638_v18, %v633_v51  ;;  %v994_v18 = vld [vmem:[#allocation2 + $0xd0] sm:$0xff]  ;;  %2483 = vmatprep.subr.bf16.mxu1 %v2482_v38  ;;  %1076 = vmatprep.mubr.f32.mxu1 %v2779_v62 }
 0x135   :  { %v231_v7 = vpop.xlane.xlu0 %230  ;;  %v3609_v44 = vmul.f32 0.015625, %v327_v34  ;;  %v891_v47 = vsel %vm653_vm15, %v890_v8, %v886_v12  ;;  %v2484_v42 = vpack.c.bf16 %v994_v18, %v992_v28  ;;  %v999_v8 = vld [vmem:[#allocation2 + $0xf8] sm:$0xff] }
 0x136   :  { %v3611_v36 = vmul.f32 0.015625, %v231_v7  ;;  %v894_v55 = vsel %vm892_vm0, %v891_v47, %v733_v48  ;;  %v647_v7 = vsel %vm646_vm14, %v645_v32, %v640_v14  ;;  %v807_v50 = vsel %vm646_vm14, %v806_v33, %v802_v57  ;;  %v998_v32 = vld [vmem:[#allocation2 + $0xf0] sm:$0xff]  ;;  %v2195_v47 = vld [vmem:[%s3961_s2] ss:$0 sm:$0xff] }
 0x137   :  { %4103 = vst [vmem:[#allocation67_spill] sm:$0xff] %v3609_v44  ;;  %v811_v34 = vrot.slane %v3609_v44, %v3296_v45  ;;  %961 = vmatprep.mubr.f32.mxu0 %v894_v55  ;;  %2485 = vmatpush1.bf16.msra.mxu1 %v2484_v42  ;;  %v997_v55 = vld [vmem:[#allocation2 + $0xe8] sm:$0xff]  ;;  %v2488_v33 = vpack.c.bf16 %v998_v32, %v996_v61  ;;  %v1008_v42 = vsub.s32 1, %v3174_v30  ;;  %v2780_v32 = vmov 0  }
 0x138   :  { %4104 = vst [vmem:[#allocation68_spill] sm:$0xff] %v3611_v36  ;;  %v652_v2 = vrot.slane %v3611_v36, %v3296_v45  ;;  %v2486_v14 = vpack.c.bf16 %v999_v8, %v997_v55  ;;  %2531 = vset.pattern.permute.xlu1 %v2780_v32  ;;  %2537 = vset.pattern.permute.xlu0 %v2780_v32 }
 0x139   :  { %v812_v15 = vsel %vm653_vm15, %v811_v34, %v807_v50  ;;  %v1000_v50 = vld [vmem:[%s3963_s4] sm:$0x3] }
 0x13a   :  { %v654_v53 = vsel %vm653_vm15, %v652_v2, %v647_v7  ;;  %2487 = vmatprep.subr.bf16.mxu1 %v2486_v14  ;;  %v1004_v7 = vsub.s32 0, %v3174_v30  ;;  %v1009_v55 = vrot.slane %v1000_v50, %v1008_v42 }
 0x13b   :  { %v893_v48 = vsel %vm892_vm0, %v812_v15, %v654_v53  ;;  %2489 = vmatpush1.bf16.msra.mxu1 %v2488_v33 }
 0x13c   :  { %962 = vmatmul.mubr.f32.vlgmr.msra.gmra.mrb[0].mxu0 %v893_v48  ;;  %v1005_v53 = vrot.slane %v1000_v50, %v1004_v7 }
 0x20f   :  { %v2388_v12 = vpop.f32.mrb[0].mxu0 }
 0x210   :  { %v2389_v51 = vpop.f32.mrb[1].mxu0 }
 0x211   :  { %v2390_v57 = vadd.f32 %v2389_v51, %v2388_v12 }
 0x213   :  { %v964_v34 = vadd.f32 %v2390_v57, %v2195_v47 }
 0x215   :  { %v967_v2 = vmax.f32 %v964_v34, 0.0 }
 0x217   :  { %1077 = vmatmul.mubr.f32.vlgmr.msra.gmra.mrb[0].mxu1 %v967_v2 }
 0x2ea   :  { %v1078_v15 = vpop.f32.mrb[0].mxu1 }
 0x2eb   :  { %v1079_v48 = vadd.f32 %v1078_v15, %v1005_v53  ;;  %v1080_v58 = vpop.f32.mrb[1].mxu1 }
 0x2ec   :  { %v1081_v61 = vadd.f32 %v1080_v58, %v1009_v55  ;;  %v4105_v58 = vld [vmem:[#allocation24_spill] sm:$0xff] }
 0x2ed   :  { %v1083_v25 = vsub.f32 0.0, %v1079_v48 }
 0x2ee   :  { %v1084_v33 = vsub.f32 0.0, %v1081_v61 }
 0x2ef   :  { %v1085_v38 = vmul.f32 1.442695, %v1083_v25 }
 0x2f0   :  { %v1087_v62 = vmul.f32 1.442695, %v1084_v33 }
 0x2f1   :  { %2693 = vpow2.f32 %v1085_v38  ;;  %v4106_v38 = vld [vmem:[#allocation25_spill] sm:$0xff] }
 0x2fb   :  { %v2694_v28 = vpop.eup %2693 }
 0x2fc   :  { %v1089_v18 = vadd.f32 1.0, %v2694_v28 }
 0x2fe   :  { %2695 = vrcp.f32 %v1089_v18 }
 0x2ff   :  { %2697 = vpow2.f32 %v1087_v62 }
 0x308   :  { %v2696_v8 = vpop.eup %2695 }
 0x309   :  { %v3637_v14 = vrot.slane %v2696_v8, %v1004_v7  ;;  %v1234_v30 = vrot.slane %v2696_v8, %v1008_v42  ;;  %v2698_v12 = vpop.eup %2697 }
 0x30a   :  { %v1090_v47 = vadd.f32 1.0, %v2698_v12 }
 0x30b   :  { %1106 = vbcast.lane.b32.xlu1 %v3637_v14, 264  ;;  %1102 = vbcast.lane.b32.xlu0 %v3637_v14, 256 }
 0x30c   :  { %2699 = vrcp.f32 %v1090_v47 }
 0x30f   :  { %1110 = vbcast.lane.b32.xlu1 %v3637_v14, 272  ;;  %1118 = vbcast.lane.b32.xlu0 %v3637_v14, 288 }
 0x313   :  { %1114 = vbcast.lane.b32.xlu1 %v3637_v14, 280  ;;  %1126 = vbcast.lane.b32.xlu0 %v3637_v14, 304 }
 0x316   :  { %v2700_v51 = vpop.eup %2699 }
 0x317   :  { %1122 = vbcast.lane.b32.xlu1 %v3637_v14, 296  ;;  %1134 = vbcast.lane.b32.xlu0 %v3637_v14, 320  ;;  %v1167_v57 = vrot.slane %v2700_v51, %v1004_v7  ;;  %v1301_v34 = vrot.slane %v2700_v51, %v1008_v42 }
 0x31b   :  { %1130 = vbcast.lane.b32.xlu1 %v3637_v14, 312  ;;  %1142 = vbcast.lane.b32.xlu0 %v3637_v14, 336 }
 0x31f   :  { %1138 = vbcast.lane.b32.xlu1 %v3637_v14, 328  ;;  %1236 = vbcast.lane.b32.xlu0 %v1234_v30, 256 }
 0x323   :  { %1240 = vbcast.lane.b32.xlu1 %v1234_v30, 264  ;;  %1244 = vbcast.lane.b32.xlu0 %v1234_v30, 272 }
 0x327   :  { %1248 = vbcast.lane.b32.xlu1 %v1234_v30, 280  ;;  %1252 = vbcast.lane.b32.xlu0 %v1234_v30, 288 }
 0x32b   :  { %1256 = vbcast.lane.b32.xlu1 %v1234_v30, 296  ;;  %1260 = vbcast.lane.b32.xlu0 %v1234_v30, 304 }
 0x32f   :  { %1264 = vbcast.lane.b32.xlu1 %v1234_v30, 312  ;;  %1268 = vbcast.lane.b32.xlu0 %v1234_v30, 320 }
 0x333   :  { %1272 = vbcast.lane.b32.xlu1 %v1234_v30, 328  ;;  %1276 = vbcast.lane.b32.xlu0 %v1234_v30, 336 }
 0x337   :  { %1169 = vbcast.lane.b32.xlu1 %v1167_v57, 256  ;;  %1146 = vbcast.lane.b32.xlu0 %v3637_v14, 344 }
 0x33b   :  { %1303 = vbcast.lane.b32.xlu1 %v1301_v34, 256  ;;  %1280 = vbcast.lane.b32.xlu0 %v1234_v30, 344 }
 0x33f   :  { %1177 = vbcast.lane.b32.xlu1 %v1167_v57, 272  ;;  %1150 = vbcast.lane.b32.xlu0 %v3637_v14, 352 }
 0x343   :  { %1181 = vbcast.lane.b32.xlu1 %v1167_v57, 280  ;;  %1284 = vbcast.lane.b32.xlu0 %v1234_v30, 352 }
 0x347   :  { %1315 = vbcast.lane.b32.xlu1 %v1301_v34, 280  ;;  %1154 = vbcast.lane.b32.xlu0 %v3637_v14, 360 }
 0x34b   :  { %1189 = vbcast.lane.b32.xlu1 %v1167_v57, 296  ;;  %1288 = vbcast.lane.b32.xlu0 %v1234_v30, 360 }
 0x34f   :  { %1323 = vbcast.lane.b32.xlu1 %v1301_v34, 296  ;;  %1158 = vbcast.lane.b32.xlu0 %v3637_v14, 368 }
 0x353   :  { %1197 = vbcast.lane.b32.xlu1 %v1167_v57, 312  ;;  %1292 = vbcast.lane.b32.xlu0 %v1234_v30, 368 }
 0x357   :  { %1331 = vbcast.lane.b32.xlu1 %v1301_v34, 312  ;;  %1173 = vbcast.lane.b32.xlu0 %v1167_v57, 264 }
 0x35b   :  { %1205 = vbcast.lane.b32.xlu1 %v1167_v57, 328  ;;  %1307 = vbcast.lane.b32.xlu0 %v1301_v34, 264 }
 0x35f   :  { %1339 = vbcast.lane.b32.xlu1 %v1301_v34, 328  ;;  %1311 = vbcast.lane.b32.xlu0 %v1301_v34, 272 }
 0x363   :  { %1296 = vbcast.lane.b32.xlu1 %v1234_v30, 376  ;;  %1185 = vbcast.lane.b32.xlu0 %v1167_v57, 288 }
 0x367   :  { %1213 = vbcast.lane.b32.xlu1 %v1167_v57, 344  ;;  %1319 = vbcast.lane.b32.xlu0 %v1301_v34, 288 }
 0x36b   :  { %1347 = vbcast.lane.b32.xlu1 %v1301_v34, 344  ;;  %1193 = vbcast.lane.b32.xlu0 %v1167_v57, 304 }
 0x36f   :  { %1217 = vbcast.lane.b32.xlu1 %v1167_v57, 352  ;;  %1327 = vbcast.lane.b32.xlu0 %v1301_v34, 304 }
 0x373   :  { %1351 = vbcast.lane.b32.xlu1 %v1301_v34, 352  ;;  %1201 = vbcast.lane.b32.xlu0 %v1167_v57, 320 }
 0x377   :  { %1221 = vbcast.lane.b32.xlu1 %v1167_v57, 360  ;;  %1335 = vbcast.lane.b32.xlu0 %v1301_v34, 320 }
 0x37b   :  { %1355 = vbcast.lane.b32.xlu1 %v1301_v34, 360  ;;  %1209 = vbcast.lane.b32.xlu0 %v1167_v57, 336 }
 0x37d   :  { %v1107_v2 = vpop.permute.xlu1 %1106  ;;  %v1103_v7 = vpop.permute.xlu0 %1102 }
 0x37e   :  { %v1430_v25 = vmul.f32 %v1107_v2, %v4105_v58  ;;  %v1429_v28 = vmul.f32 %v1103_v7, %v4106_v38 }
 0x37f   :  { %1225 = vbcast.lane.b32.xlu1 %v1167_v57, 368  ;;  %1343 = vbcast.lane.b32.xlu0 %v1301_v34, 336 }
 0x380   :  { %v2532_v55 = vpack.i.bf16 %v1430_v25, %v1429_v28 }
 0x381   :  { %v1111_v50 = vpop.permute.xlu1 %1110  ;;  %v3654_v53 = vpop.permute.xlu0 %1118 }
 0x383   :  { %1359 = vbcast.lane.b32.xlu1 %v1301_v34, 368  ;;  %1162 = vbcast.lane.b32.xlu0 %v3637_v14, 376 }
 0x385   :  { %v3657_v15 = vpop.permute.xlu1 %1114  ;;  %v3659_v48 = vpop.permute.xlu0 %1126 }
 0x387   :  { %1229 = vbcast.lane.b32.xlu1 %v1167_v57, 376 }
 0x389   :  { %v3663_v18 = vpop.permute.xlu1 %1122  ;;  %v3665_v42 = vpop.permute.xlu0 %1134 }
 0x38b   :  { %1363 = vbcast.lane.b32.xlu1 %v1301_v34, 376 }
 0x38d   :  { %v3667_v8 = vpop.permute.xlu1 %1130  ;;  %v3669_v61 = vpop.permute.xlu0 %1142 }
 0x38e   :  { %4107 = vst [vmem:[#allocation24_spill] sm:$0xff] %v3669_v61 }
 0x38f   :  { %2533 = vperm.xlu1 %2531, %v2532_v55  }
 0x391   :  { %v3671_v14 = vpop.permute.xlu1 %1138  ;;  %v1237_v32 = vpop.permute.xlu0 %1236 }
 0x392   :  { %4108 = vst [vmem:[#allocation25_spill] sm:$0xff] %v3671_v14 }
 0x395   :  { %v1241_v33 = vpop.permute.xlu1 %1240  ;;  %v1245_v62 = vpop.permute.xlu0 %1244 }
 0x399   :  { %v1249_v30 = vpop.permute.xlu1 %1248  ;;  %v3673_v12 = vpop.permute.xlu0 %1252 }
 0x39d   :  { %v3675_v47 = vpop.permute.xlu1 %1256  ;;  %v3677_v51 = vpop.permute.xlu0 %1260 }
 0x3a1   :  { %v3679_v57 = vpop.permute.xlu1 %1264  ;;  %v3681_v34 = vpop.permute.xlu0 %1268 }
 0x3a2   :  { %4109 = vst [vmem:[#allocation69_spill] sm:$0xff] %v3681_v34  ;;  %v4124_v34 = vld [vmem:[#allocation20_spill] sm:$0xff] }
 0x3a5   :  { %v3683_v2 = vpop.permute.xlu1 %1272  ;;  %v3685_v7 = vpop.permute.xlu0 %1276 }
 0x3a6   :  { %4110 = vst [vmem:[#allocation70_spill] sm:$0xff] %v3683_v2  ;;  %4111 = vst [vmem:[#allocation71_spill] sm:$0xff] %v3685_v7 }
 0x3a9   :  { %v1170_v58 = vpop.permute.xlu1 %1169  ;;  %v3687_v25 = vpop.permute.xlu0 %1146 }
 0x3aa   :  { %4112 = vst [vmem:[#allocation72_spill] sm:$0xff] %v3687_v25 }
 0x3ad   :  { %v1304_v38 = vpop.permute.xlu1 %1303  ;;  %v3689_v28 = vpop.permute.xlu0 %1280 }
 0x3ae   :  { %4113 = vst [vmem:[#allocation73_spill] sm:$0xff] %v3689_v28 }
 0x3b1   :  { %v1178_v55 = vpop.permute.xlu1 %1177  ;;  %v3691_v45 = vpop.permute.xlu0 %1150 }
 0x3b2   :  { %4114 = vst [vmem:[#allocation74_spill] sm:$0xff] %v3691_v45  ;;  %v1445_v45 = vmul.f32 %v1170_v58, %v4120_v37  ;;  %v4126_v58 = vld [vmem:[#allocation33_spill] sm:$0xff] }
 0x3b5   :  { %v1182_v44 = vpop.permute.xlu1 %1181  ;;  %v3693_v36 = vpop.permute.xlu0 %1284 }
 0x3b6   :  { %4115 = vst [vmem:[#allocation75_spill] sm:$0xff] %v3693_v36  ;;  %v4122_v36 = vld [vmem:[#allocation32_spill] sm:$0xff]  ;;  %v1448_v9 = vmul.f32 %v1182_v44, %v3260_v56  ;;  %v1432_v56 = vmul.f32 %v3657_v15, %v3311_v21 }
 0x3b7   :  { %v1447_v52 = vmul.f32 %v1178_v55, %v4122_v36  ;;  %v1431_v36 = vmul.f32 %v1111_v50, %v3272_v29 }
 0x3b9   :  { %v1316_v31 = vpop.permute.xlu1 %1315  ;;  %v3695_v41 = vpop.permute.xlu0 %1154 }
 0x3ba   :  { %4116 = vst [vmem:[#allocation76_spill] sm:$0xff] %v3695_v41 }
 0x3bd   :  { %v1190_v27 = vpop.permute.xlu1 %1189  ;;  %v3697_v60 = vpop.permute.xlu0 %1288 }
 0x3be   :  { %4117 = vst [vmem:[#allocation77_spill] sm:$0xff] %v3697_v60  ;;  %v1461_v60 = vmul.f32 %v1237_v32, %v3281_v26  ;;  %v2558_v26 = vpack.i.bf16 %v1448_v9, %v1431_v36  ;;  %v1450_v44 = vmul.f32 %v1190_v27, %v3332_v22  ;;  %v1434_v22 = vmul.f32 %v3663_v18, %v3366_v1  ;;  %v4128_v27 = vld [vmem:[#allocation38_spill] sm:$0xff]  ;;  %v4129_v1 = vld [vmem:[#allocation39_spill] sm:$0xff] }
 0x3bf   :  { %v1437_v36 = vmul.f32 %v3665_v42, %v3447_v24  ;;  %v4137_v42 = vld [vmem:[#allocation44_spill] sm:$0xff] }
 0x3c1   :  { %v1324_v11 = vpop.permute.xlu1 %1323  ;;  %v3699_v20 = vpop.permute.xlu0 %1158 }
 0x3c2   :  { %4118 = vst [vmem:[#allocation78_spill] sm:$0xff] %v3699_v20  ;;  %v1477_v20 = vmul.f32 %v1304_v38, %v4123_v23  ;;  %v4127_v23 = vld [vmem:[#allocation36_spill] sm:$0xff]  ;;  %v1482_v21 = vmul.f32 %v1324_v11, %v3345_v49  ;;  %v1435_v11 = vmul.f32 %v3659_v48, %v3386_v3  ;;  %v1467_v3 = vmul.f32 %v3677_v51, %v3399_v5 }
 0x3c3   :  { %v1480_v32 = vmul.f32 %v1316_v31, %v4127_v23  ;;  %v1433_v31 = vmul.f32 %v3654_v53, %v3339_v4 }
 0x3c5   :  { %v1198_v7 = vpop.permute.xlu1 %1197  ;;  %v3701_v25 = vpop.permute.xlu0 %1292 }
 0x3c6   :  { %4119 = vst [vmem:[#allocation79_spill] sm:$0xff] %v3701_v25  ;;  %v2548_v25 = vpack.i.bf16 %v1461_v60, %v1447_v52  ;;  %v1463_v52 = vmul.f32 %v1245_v62, %v3287_v39  ;;  %v2578_v39 = vpack.i.bf16 %v1450_v44, %v1433_v31 }
 0x3c9   :  { %v3703_v54 = vpop.permute.xlu1 %1331  ;;  %v1174_v28 = vpop.permute.xlu0 %1173 }
 0x3ca   :  { %v1446_v2 = vmul.f32 %v1174_v28, %v4121_v13 }
 0x3cc   :  { %v2538_v61 = vpack.i.bf16 %v1446_v2, %v1445_v45  ;;  %v4125_v45 = vld [vmem:[#allocation34_spill] sm:$0xff] }
 0x3cd   :  { %v3708_v41 = vpop.permute.xlu1 %1205  ;;  %v1308_v63 = vpop.permute.xlu0 %1307  ;;  %v1462_v2 = vmul.f32 %v1241_v33, %v4125_v45  ;;  %v4130_v45 = vld [vmem:[#allocation41_spill] sm:$0xff] }
 0x3ce   :  { %v1478_v14 = vmul.f32 %v1308_v63, %v4124_v34  ;;  %2539 = vperm.xlu0 %2537, %v2538_v61   ;;  %v1465_v34 = vmul.f32 %v3673_v12, %v4128_v27 }
 0x3d0   :  { %v2543_v6 = vpack.i.bf16 %v1478_v14, %v1477_v20  ;;  %v2563_v20 = vpack.i.bf16 %v1480_v32, %v1463_v52  ;;  %v1464_v14 = vmul.f32 %v1249_v30, %v3329_v59  ;;  %v1452_v59 = vmul.f32 %v1198_v7, %v3378_v17  ;;  %v4135_v32 = vld [vmem:[#allocation43_spill] sm:$0xff] }
 0x3d1   :  { %v3714_v37 = vpop.permute.xlu1 %1339  ;;  %v1312_v13 = vpop.permute.xlu0 %1311  ;;  %v1436_v7 = vmul.f32 %v3667_v8, %v3420_v46  ;;  %v1468_v46 = vmul.f32 %v3679_v57, %v4130_v45  ;;  %v4131_v8 = vld [vmem:[#allocation40_spill] sm:$0xff]  ;;  %v1509_v57 = vld [vmem:[#allocation5 + $0x80] sm:$0xff]  ;;  %v4150_v45 = vld [vmem:[#allocation53_spill] sm:$0xff] }
 0x3d2   :  { %v1479_v28 = vmul.f32 %v1312_v13, %v4126_v58  ;;  %2549 = vperm.xlu0 %2537, %v2548_v25   ;;  %2544 = vperm.xlu1 %2531, %v2543_v6   ;;  %v1466_v25 = vmul.f32 %v3675_v47, %v3375_v10  ;;  %v2598_v12 = vpack.i.bf16 %v1452_v59, %v1435_v11  ;;  %v1511_v59 = vld [vmem:[#allocation5 + $0x90] sm:$0xff]  ;;  %v4145_v11 = vld [vmem:[#allocation51_spill] sm:$0xff] }
 0x3d3   :  { %v1454_v47 = vmul.f32 %v3708_v41, %v3440_v16  ;;  %v4133_v41 = vld [vmem:[#allocation14_spill] sm:$0xff] }
 0x3d4   :  { %v2553_v63 = vpack.i.bf16 %v1479_v28, %v1462_v2 }
 0x3d5   :  { %v3720_v61 = vpop.permute.xlu1 %1296  ;;  %v1186_v60 = vpop.permute.xlu0 %1185  ;;  %v2618_v5 = vpack.i.bf16 %v1454_v47, %v1437_v36  ;;  %v4149_v47 = vld [vmem:[#allocation72_spill] sm:$0xff] }
 0x3d6   :  { %v1449_v29 = vmul.f32 %v1186_v60, %v3304_v35  ;;  %2559 = vperm.xlu0 %2537, %v2558_v26   ;;  %2554 = vperm.xlu1 %2531, %v2553_v63   ;;  %v4134_v26 = vld [vmem:[#allocation25_spill] sm:$0xff]  ;;  %v1514_v36 = vld [vmem:[#allocation5 + $0xa8] sm:$0xff] }
 0x3d7   :  { %v1438_v23 = vmul.f32 %v4134_v26, %v4133_v41  ;;  %v4136_v63 = vld [vmem:[#allocation69_spill] sm:$0xff] }
 0x3d8   :  { %v2568_v6 = vpack.i.bf16 %v1449_v29, %v1432_v56  ;;  %v1469_v24 = vmul.f32 %v4136_v63, %v4135_v32  ;;  %v1510_v56 = vld [vmem:[#allocation5 + $0x88] sm:$0xff]  ;;  %v4153_v41 = vld [vmem:[#allocation73_spill] sm:$0xff]  ;;  %v4155_v32 = vld [vmem:[#allocation74_spill] sm:$0xff] }
 0x3d9   :  { %v1214_v9 = vpop.permute.xlu1 %1213  ;;  %v1320_v50 = vpop.permute.xlu0 %1319  ;;  %v4138_v29 = vld [vmem:[#allocation47_spill] sm:$0xff] }
 0x3da   :  { %v1481_v33 = vmul.f32 %v1320_v50, %v3324_v43  ;;  %2564 = vperm.xlu1 %2531, %v2563_v20   ;;  %2569 = vperm.xlu0 %2537, %v2568_v6   ;;  %v2583_v43 = vpack.i.bf16 %v1482_v21, %v1465_v34  ;;  %v1456_v20 = vmul.f32 %v1214_v9, %v4138_v29  ;;  %v1493_v6 = vld [vmem:[#allocation5] sm:$0xff]  ;;  %v1494_v50 = vld [vmem:[#allocation5 + $0x8] sm:$0xff]  ;;  %v4143_v34 = vld [vmem:[#allocation45_spill] sm:$0xff] }
 0x3db   :  { %v4140_v21 = vld [vmem:[#allocation24_spill] sm:$0xff] }
 0x3dc   :  { %v2573_v35 = vpack.i.bf16 %v1481_v33, %v1464_v14  ;;  %v2492_v33 = vpack.c.bf16 %v1494_v50, %v1493_v6  ;;  %v4158_v6 = vld [vmem:[#allocation61_spill] sm:$0xff]  ;;  %v4159_v50 = vld [vmem:[#allocation75_spill] sm:$0xff] }
 0x3dd   :  { %v3732_v15 = vpop.permute.xlu1 %1347  ;;  %v1194_v62 = vpop.permute.xlu0 %1193 }
 0x3de   :  { %v1451_v4 = vmul.f32 %v1194_v62, %v3359_v0  ;;  %2579 = vperm.xlu0 %2537, %v2578_v39   ;;  %2574 = vperm.xlu1 %2531, %v2573_v35   ;;  %v1484_v0 = vmul.f32 %v3703_v54, %v3396_v40  ;;  %v4139_v39 = vld [vmem:[#allocation48_spill] sm:$0xff]  ;;  %v4141_v62 = vld [vmem:[#allocation46_spill] sm:$0xff] }
 0x3df   :  { %v1439_v35 = vmul.f32 %v4140_v21, %v4139_v39  ;;  %v4160_v39 = vld [vmem:[#allocation62_spill] sm:$0xff]  ;;  %v4161_v21 = vld [vmem:[#allocation76_spill] sm:$0xff] }
 0x3e0   :  { %v2588_v53 = vpack.i.bf16 %v1451_v4, %v1434_v22  ;;  %v2603_v48 = vpack.i.bf16 %v1484_v0, %v1467_v3  ;;  %v4142_v22 = vld [vmem:[#allocation70_spill] sm:$0xff] }
 0x3e1   :  { %v1218_v30 = vpop.permute.xlu1 %1217  ;;  %v1328_v49 = vpop.permute.xlu0 %1327  ;;  %v1470_v27 = vmul.f32 %v4142_v22, %v4141_v62  ;;  %v1496_v0 = vld [vmem:[#allocation5 + $0x18] sm:$0xff]  ;;  %v1517_v62 = vld [vmem:[#allocation5 + $0xc0] sm:$0xff]  ;;  %v1518_v22 = vld [vmem:[#allocation5 + $0xc8] sm:$0xff] }
 0x3e2   :  { %v1483_v18 = vmul.f32 %v1328_v49, %v4129_v1  ;;  %2584 = vperm.xlu1 %2531, %v2583_v43   ;;  %2589 = vperm.xlu0 %2537, %v2588_v53   ;;  %v4144_v43 = vld [vmem:[#allocation49_spill] sm:$0xff]  ;;  %v2638_v49 = vpack.i.bf16 %v1456_v20, %v1439_v35  ;;  %v1442_v35 = vmul.f32 %v4161_v21, %v4160_v39 }
 0x3e3   :  { %v1488_v9 = vmul.f32 %v3732_v15, %v4144_v43  ;;  %v1512_v53 = vld [vmem:[#allocation5 + $0x98] sm:$0xff]  ;;  %v4163_v43 = vld [vmem:[#allocation59_spill] sm:$0xff] }
 0x3e4   :  { %v2593_v38 = vpack.i.bf16 %v1483_v18, %v1466_v25  ;;  %v1457_v25 = vmul.f32 %v1218_v30, %v4145_v11  ;;  %v2494_v18 = vpack.c.bf16 %v1512_v53, %v1511_v59  ;;  %v2506_v59 = vpack.c.bf16 %v1518_v22, %v1517_v62  ;;  %v1501_v53 = vld [vmem:[#allocation5 + $0x40] sm:$0xff] }
 0x3e5   :  { %v3747_v55 = vpop.permute.xlu1 %1351  ;;  %v1202_v17 = vpop.permute.xlu0 %1201 }
 0x3e6   :  { %v1453_v10 = vmul.f32 %v1202_v17, %v3413_v19  ;;  %2599 = vperm.xlu0 %2537, %v2598_v12   ;;  %2594 = vperm.xlu1 %2531, %v2593_v38   ;;  %v4132_v19 = vld [vmem:[#allocation42_spill] sm:$0xff]  ;;  %v1495_v12 = vld [vmem:[#allocation5 + $0x10] sm:$0xff]  ;;  %v4147_v17 = vld [vmem:[#allocation71_spill] sm:$0xff] }
 0x3e7   :  { %v1486_v51 = vmul.f32 %v3714_v37, %v4132_v19  ;;  %v2490_v37 = vpack.c.bf16 %v1510_v56, %v1509_v57  ;;  %v4146_v38 = vld [vmem:[#allocation50_spill] sm:$0xff] }
 0x3e8   :  { %v2608_v13 = vpack.i.bf16 %v1453_v10, %v1436_v7  ;;  %v1471_v7 = vmul.f32 %v4147_v17, %v4146_v38  ;;  %v2496_v10 = vpack.c.bf16 %v1496_v0, %v1495_v12  ;;  %v1497_v19 = vld [vmem:[#allocation5 + $0x20] sm:$0xff]  ;;  %v1516_v57 = vld [vmem:[#allocation5 + $0xb8] sm:$0xff]  ;;  %v4166_v0 = vld [vmem:[#allocation64_spill] sm:$0xff] }
 0x3e9   :  { %v1222_v40 = vpop.permute.xlu1 %1221  ;;  %v1336_v54 = vpop.permute.xlu0 %1335  ;;  %v2623_v52 = vpack.i.bf16 %v1486_v51, %v1469_v24  ;;  %2491 = vmatprep.subr.bf16.mxu0 %v2490_v37  ;;  %v1498_v51 = vld [vmem:[#allocation5 + $0x28] sm:$0xff]  ;;  %v1500_v37 = vld [vmem:[#allocation5 + $0x38] sm:$0xff] }
 0x3ea   :  { %v1485_v2 = vmul.f32 %v1336_v54, %v4131_v8  ;;  %2604 = vperm.xlu1 %2531, %v2603_v48   ;;  %2609 = vperm.xlu0 %2537, %v2608_v13   ;;  %v4148_v48 = vld [vmem:[#allocation52_spill] sm:$0xff]  ;;  %v2643_v15 = vpack.i.bf16 %v1488_v9, %v1471_v7  ;;  %v1513_v54 = vld [vmem:[#allocation5 + $0xa0] sm:$0xff] }
 0x3eb   :  { %2493 = vmatpush3.bf16.msra.mxu0 %v2492_v33  ;;  %v1440_v13 = vmul.f32 %v4149_v47, %v4148_v48  ;;  %v4151_v8 = vld [vmem:[#allocation55_spill] sm:$0xff]  ;;  %v4156_v24 = vld [vmem:[#allocation56_spill] sm:$0xff]  ;;  %v4167_v38 = vld [vmem:[#allocation78_spill] sm:$0xff] }
 0x3ec   :  { %v2613_v58 = vpack.i.bf16 %v1485_v2, %v1468_v46  ;;  %2495 = vmatprep.subr.bf16.mxu0 %v2494_v18  ;;  %v1489_v46 = vmul.f32 %v3747_v55, %v4150_v45  ;;  %v1458_v2 = vmul.f32 %v1222_v40, %v4151_v8  ;;  %v1515_v55 = vld [vmem:[#allocation5 + $0xb0] sm:$0xff]  ;;  %v1443_v17 = vmul.f32 %v4167_v38, %v4166_v0  ;;  %v1520_v48 = vld [vmem:[#allocation5 + $0xd8] sm:$0xff] }
 0x3ed   :  { %v1356_v28 = vpop.permute.xlu1 %1355  ;;  %v1210_v16 = vpop.permute.xlu0 %1209  ;;  %v2648_v30 = vpack.i.bf16 %v1457_v25, %v1440_v13  ;;  %v2502_v20 = vpack.c.bf16 %v1516_v57, %v1515_v55  ;;  %v4165_v18 = vld [vmem:[#allocation77_spill] sm:$0xff]  ;;  %v4168_v7 = vld [vmem:[#allocation68_spill] sm:$0xff]  ;;  %v4170_v8 = vld [vmem:[#allocation66_spill] sm:$0xff] }
 0x3ee   :  { %v1455_v60 = vmul.f32 %v1210_v16, %v4137_v42  ;;  %2619 = vperm.xlu0 %2537, %v2618_v5   ;;  %2614 = vperm.xlu1 %2531, %v2613_v58   ;;  %v2498_v5 = vpack.c.bf16 %v1514_v36, %v1513_v54  ;;  %v2500_v58 = vpack.c.bf16 %v1498_v51, %v1497_v19  ;;  %v4152_v16 = vld [vmem:[#allocation54_spill] sm:$0xff]  ;;  %v4172_v19 = vld [vmem:[#allocation67_spill] sm:$0xff] }
 0x3ef   :  { %2497 = vmatpush3.bf16.msra.mxu0 %v2496_v10  ;;  %v1472_v26 = vmul.f32 %v4153_v41, %v4152_v16  ;;  %v1490_v42 = vmul.f32 %v1356_v28, %v4156_v24  ;;  %v1504_v45 = vld [vmem:[#allocation5 + $0x58] sm:$0xff]  ;;  %v1476_v51 = vmul.f32 %v3720_v61, %v4172_v19  ;;  %v1522_v16 = vld [vmem:[#allocation5 + $0xe8] sm:$0xff]  ;;  %v1507_v61 = vld [vmem:[#allocation5 + $0x70] sm:$0xff] }
 0x3f0   :  { %v2628_v44 = vpack.i.bf16 %v1455_v60, %v1438_v23  ;;  %v4154_v23 = vld [vmem:[#allocation60_spill] sm:$0xff]  ;;  %2499 = vmatprep.subr.bf16.mxu0 %v2498_v5  ;;  %v1508_v57 = vld [vmem:[#allocation5 + $0x78] sm:$0xff] }
 0x3f1   :  { %v1226_v31 = vpop.permute.xlu1 %1225  ;;  %v1344_v14 = vpop.permute.xlu0 %1343  ;;  %v1441_v63 = vmul.f32 %v4155_v32, %v4154_v23  ;;  %v2653_v40 = vpack.i.bf16 %v1489_v46, %v1472_v26  ;;  %v1505_v32 = vld [vmem:[#allocation5 + $0x60] sm:$0xff] }
 0x3f2   :  { %v1487_v4 = vmul.f32 %v1344_v14, %v4143_v34  ;;  %2624 = vperm.xlu1 %2531, %v2623_v52   ;;  %2629 = vperm.xlu0 %2537, %v2628_v44   ;;  %v4157_v52 = vld [vmem:[#allocation57_spill] sm:$0xff]  ;;  %v1473_v14 = vmul.f32 %v4159_v50, %v4158_v6  ;;  %v4162_v34 = vld [vmem:[#allocation58_spill] sm:$0xff] }
 0x3f3   :  { %v2658_v56 = vpack.i.bf16 %v1458_v2, %v1441_v63  ;;  %v1459_v29 = vmul.f32 %v1226_v31, %v4157_v52  ;;  %2501 = vmatpush3.bf16.msra.mxu0 %v2500_v58  ;;  %v1499_v44 = vld [vmem:[#allocation5 + $0x30] sm:$0xff]  ;;  %v4171_v2 = vld [vmem:[#allocation79_spill] sm:$0xff] }
 0x3f4   :  { %v2633_v1 = vpack.i.bf16 %v1487_v4, %v1470_v27  ;;  %v2504_v33 = vpack.c.bf16 %v1500_v37, %v1499_v44  ;;  %v2663_v28 = vpack.i.bf16 %v1490_v42, %v1473_v14  ;;  %2503 = vmatprep.subr.bf16.mxu0 %v2502_v20  ;;  %v1475_v5 = vmul.f32 %v4171_v2, %v4170_v8  ;;  %v1521_v58 = vld [vmem:[#allocation5 + $0xe0] sm:$0xff]  ;;  %v1506_v63 = vld [vmem:[#allocation5 + $0x68] sm:$0xff]  ;;  %v1523_v42 = vld [vmem:[#allocation5 + $0xf0] sm:$0xff] }
 0x3f5   :  { %v1360_v3 = vpop.permute.xlu1 %1359  ;;  %v2668_v27 = vpack.i.bf16 %v1459_v29, %v1442_v35  ;;  %v1163_v4 = vpop.permute.xlu0 %1162  ;;  %v2514_v23 = vpack.c.bf16 %v1522_v16, %v1521_v58  ;;  %v2516_v24 = vpack.c.bf16 %v1506_v63, %v1505_v32 }
 0x3f6   :  { %2639 = vperm.xlu0 %2537, %v2638_v49   ;;  %2634 = vperm.xlu1 %2531, %v2633_v1   ;;  %v1491_v31 = vmul.f32 %v1360_v3, %v4162_v34  ;;  %v1502_v49 = vld [vmem:[#allocation5 + $0x48] sm:$0xff]  ;;  %v1444_v10 = vmul.f32 %v1163_v4, %v4168_v7  ;;  %v1519_v3 = vld [vmem:[#allocation5 + $0xd0] sm:$0xff] }
 0x3f7   :  { %2505 = vmatpush3.bf16.msra.mxu0 %v2504_v33  ;;  %v2508_v25 = vpack.c.bf16 %v1502_v49, %v1501_v53  ;;  %v4164_v1 = vld [vmem:[#allocation63_spill] sm:$0xff]  ;;  %v2510_v36 = vpack.c.bf16 %v1520_v48, %v1519_v3 }
 0x3f8   :  { %v1474_v12 = vmul.f32 %v4165_v18, %v4164_v1  ;;  %2507 = vmatprep.subr.bf16.mxu0 %v2506_v59  ;;  %v2688_v41 = vpack.i.bf16 %v1476_v51, %v1444_v10 }
 0x3f9   :  { %v1230_v60 = vpop.permute.xlu1 %1229 }
 0x3fa   :  { %2649 = vperm.xlu0 %2537, %v2648_v30   ;;  %2644 = vperm.xlu1 %2531, %v2643_v15   ;;  %v1460_v9 = vmul.f32 %v1230_v60, %v4163_v43  ;;  %v2673_v47 = vpack.i.bf16 %v1491_v31, %v1474_v12  ;;  %v4169_v15 = vld [vmem:[#allocation65_spill] sm:$0xff] }
 0x3fb   :  { %2509 = vmatpush3.bf16.msra.mxu0 %v2508_v25  ;;  %v1503_v30 = vld [vmem:[#allocation5 + $0x50] sm:$0xff]  ;;  %v1524_v60 = vld [vmem:[#allocation5 + $0xf8] sm:$0xff] }
 0x3fc   :  { %v2678_v13 = vpack.i.bf16 %v1460_v9, %v1443_v17  ;;  %v2512_v46 = vpack.c.bf16 %v1504_v45, %v1503_v30  ;;  %2511 = vmatprep.subr.bf16.mxu0 %v2510_v36  ;;  %v2518_v55 = vpack.c.bf16 %v1524_v60, %v1523_v42  ;;  %v4174_v9 = vld [vmem:[#allocation11_spill] sm:$0xff]  ;;  %v4175_v17 = vld [vmem:[#allocation13_spill] sm:$0xff] }
 0x3fd   :  { %v1364_v11 = vpop.permute.xlu1 %1363  ;;  %v4176_v36 = vld [vmem:[#allocation15_spill] sm:$0xff] }
 0x3fe   :  { %2659 = vperm.xlu0 %2537, %v2658_v56   ;;  %2654 = vperm.xlu1 %2531, %v2653_v40   ;;  %v1492_v54 = vmul.f32 %v1364_v11, %v4169_v15  ;;  %v2520_v40 = vpack.c.bf16 %v1508_v57, %v1507_v61  ;;  %v4177_v61 = vld [vmem:[#allocation16_spill] sm:$0xff] }
 0x3ff   :  { %2513 = vmatpush3.bf16.msra.mxu0 %v2512_v46 }
 0x400   :  { %v2683_v26 = vpack.i.bf16 %v1492_v54, %v1475_v5  ;;  %2515 = vmatprep.subr.bf16.mxu0 %v2514_v23 }
 0x402   :  { %2669 = vperm.xlu0 %2537, %v2668_v27   ;;  %2664 = vperm.xlu1 %2531, %v2663_v28   ;;  %v4173_v27 = vld [vmem:[#allocation12_spill] sm:$0xff] }
 0x403   :  { %2517 = vmatpush3.bf16.msra.mxu0 %v2516_v24 }
 0x404   :  { %2519 = vmatprep.subr.bf16.mxu0 %v2518_v55 }
 0x406   :  { %2679 = vperm.xlu0 %2537, %v2678_v13   ;;  %2674 = vperm.xlu1 %2531, %v2673_v47  }
 0x407   :  { %2521 = vmatpush3.bf16.msra.mxu0 %v2520_v40 }
 0x40a   :  { %2684 = vperm.xlu1 %2531, %v2683_v26   ;;  %2689 = vperm.xlu0 %2537, %v2688_v41  }
 0x40e   :  { %v2534_v56 = vpop.permute.xlu1 %2533 }
 0x40f   :  { %v2536_v14 = vunpack.i.h.bf16 %v2534_v56  ;;  %v2535_v21 = vunpack.i.l.bf16 %v2534_v56 }
 0x411   :  { %v1795_v34 = vrot.slane %v2536_v14, %v4173_v27  ;;  %v1791_v59 = vrot.slane %v2535_v21, %v4174_v9 }
 0x413   :  { %v1796_v46 = vsel %vm555_vm1, %v1795_v34, %v1791_v59 }
 0x44d   :  { %v2540_v52 = vpop.permute.xlu0 %2539 }
 0x44e   :  { %v2542_v35 = vunpack.i.h.bf16 %v2540_v52  ;;  %v2541_v28 = vunpack.i.l.bf16 %v2540_v52 }
 0x450   :  { %v1874_v25 = vrot.slane %v2542_v35, %v4173_v27  ;;  %v1870_v1 = vrot.slane %v2541_v28, %v4174_v9 }
 0x451   :  { %v2545_v29 = vpop.permute.xlu1 %2544  ;;  %v2550_v20 = vpop.permute.xlu0 %2549 }
 0x452   :  { %v2547_v62 = vunpack.i.h.bf16 %v2545_v29  ;;  %v2546_v22 = vunpack.i.l.bf16 %v2545_v29  ;;  %v2551_v31 = vunpack.i.l.bf16 %v2550_v20  ;;  %v2552_v18 = vunpack.i.h.bf16 %v2550_v20 }
 0x453   :  { %v1875_v8 = vsel %vm555_vm1, %v1874_v25, %v1870_v1  ;;  %v4179_v25 = vld [vmem:[#allocation18_spill] sm:$0xff] }
 0x454   :  { %v2032_v0 = vrot.slane %v2547_v62, %v4173_v27  ;;  %v2028_v38 = vrot.slane %v2546_v22, %v4174_v9  ;;  %v1879_v7 = vrot.slane %v2551_v31, %v4175_v17  ;;  %v1949_v2 = vrot.slane %v2552_v18, %v4174_v9 }
 0x455   :  { %v2555_v44 = vpop.permute.xlu1 %2554  ;;  %v2560_v37 = vpop.permute.xlu0 %2559 }
 0x456   :  { %v2557_v53 = vunpack.i.h.bf16 %v2555_v44  ;;  %v2556_v49 = vunpack.i.l.bf16 %v2555_v44  ;;  %v2562_v11 = vunpack.i.h.bf16 %v2560_v37  ;;  %v2561_v12 = vunpack.i.l.bf16 %v2560_v37  ;;  %v4178_v37 = vld [vmem:[#allocation17_spill] sm:$0xff] }
 0x457   :  { %v2033_v19 = vsel %vm555_vm1, %v2032_v0, %v2028_v38  ;;  %v1880_v41 = vsel %vm562_vm2, %v1879_v7, %v1875_v8 }
 0x458   :  { %v2037_v15 = vrot.slane %v2557_v53, %v4175_v17  ;;  %v1953_v54 = vrot.slane %v2556_v49, %v4173_v27  ;;  %v1884_v30 = vrot.slane %v2562_v11, %v4176_v36  ;;  %v1800_v5 = vrot.slane %v2561_v12, %v4175_v17 }
 0x459   :  { %v2565_v6 = vpop.permute.xlu1 %2564  ;;  %v2570_v50 = vpop.permute.xlu0 %2569 }
 0x45a   :  { %v2567_v10 = vunpack.i.h.bf16 %v2565_v6  ;;  %v2566_v3 = vunpack.i.l.bf16 %v2565_v6  ;;  %v2571_v48 = vunpack.i.l.bf16 %v2570_v50  ;;  %v2572_v45 = vunpack.i.h.bf16 %v2570_v50 }
 0x45b   :  { %v2038_v42 = vsel %vm562_vm2, %v2037_v15, %v2033_v19  ;;  %v1954_v60 = vsel %vm555_vm1, %v1953_v54, %v1949_v2  ;;  %v1885_v55 = vsel %vm569_vm3, %v1884_v30, %v1880_v41  ;;  %v1801_v40 = vsel %vm562_vm2, %v1800_v5, %v1796_v46 }
 0x45c   :  { %v2042_v26 = vrot.slane %v2567_v10, %v4176_v36  ;;  %v1958_v23 = vrot.slane %v2566_v3, %v4175_v17  ;;  %v1805_v32 = vrot.slane %v2571_v48, %v4176_v36  ;;  %v1889_v57 = vrot.slane %v2572_v45, %v4177_v61  ;;  %v4180_v3 = vld [vmem:[#allocation19_spill] sm:$0xff] }
 0x45d   :  { %v2575_v33 = vpop.permute.xlu1 %2574  ;;  %v3806_v39 = vpop.permute.xlu0 %2579 }
 0x45e   :  { %v2577_v51 = vunpack.i.h.bf16 %v2575_v33  ;;  %v2576_v58 = vunpack.i.l.bf16 %v2575_v33  ;;  %v2582_v16 = vunpack.i.h.bf16 %v3806_v39  ;;  %v2581_v56 = vunpack.i.l.bf16 %v3806_v39 }
 0x45f   :  { %v1959_v14 = vsel %vm562_vm2, %v1958_v23, %v1954_v60  ;;  %v2043_v33 = vsel %vm569_vm3, %v2042_v26, %v2038_v42  ;;  %v1806_v21 = vsel %vm569_vm3, %v1805_v32, %v1801_v40  ;;  %v1890_v62 = vsel %vm576_vm4, %v1889_v57, %v1885_v55  ;;  %v4181_v32 = vld [vmem:[#allocation21_spill] sm:$0xff]  ;;  %v4182_v40 = vld [vmem:[#allocation22_spill] sm:$0xff] }
 0x460   :  { %v2047_v20 = vrot.slane %v2577_v51, %v4177_v61  ;;  %v1963_v44 = vrot.slane %v2576_v58, %v4176_v36  ;;  %v1894_v6 = vrot.slane %v2582_v16, %v4178_v37  ;;  %v1810_v31 = vrot.slane %v2581_v56, %v4177_v61 }
 0x461   :  { %v2585_v4 = vpop.permute.xlu1 %2584  ;;  %v3809_v43 = vpop.permute.xlu0 %2589 }
 0x462   :  { %v2587_v52 = vunpack.i.h.bf16 %v2585_v4  ;;  %v2586_v29 = vunpack.i.l.bf16 %v2585_v4  ;;  %v2591_v50 = vunpack.i.l.bf16 %v3809_v43  ;;  %v2592_v35 = vunpack.i.h.bf16 %v3809_v43 }
 0x463   :  { %v2048_v53 = vsel %vm576_vm4, %v2047_v20, %v2043_v33  ;;  %v1964_v43 = vsel %vm569_vm3, %v1963_v44, %v1959_v14  ;;  %v1895_v49 = vsel %vm583_vm5, %v1894_v6, %v1890_v62 }
 0x464   :  { %v2052_v4 = vrot.slane %v2587_v52, %v4178_v37  ;;  %v1968_v9 = vrot.slane %v2586_v29, %v4177_v61  ;;  %v1815_v11 = vrot.slane %v2591_v50, %v4178_v37  ;;  %v1899_v1 = vrot.slane %v2592_v35, %v4179_v25 }
 0x465   :  { %v2595_v47 = vpop.permute.xlu1 %2594  ;;  %v3817_v13 = vpop.permute.xlu0 %2599 }
 0x466   :  { %v2597_v22 = vunpack.i.h.bf16 %v2595_v47  ;;  %v2596_v27 = vunpack.i.l.bf16 %v2595_v47  ;;  %v2602_v34 = vunpack.i.h.bf16 %v3817_v13  ;;  %v2601_v59 = vunpack.i.l.bf16 %v3817_v13 }
 0x467   :  { %v1811_v13 = vsel %vm576_vm4, %v1810_v31, %v1806_v21  ;;  %v1969_v15 = vsel %vm576_vm4, %v1968_v9, %v1964_v43  ;;  %v2053_v54 = vsel %vm583_vm5, %v2052_v4, %v2048_v53  ;;  %v1900_v2 = vsel %vm590_vm6, %v1899_v1, %v1895_v49  ;;  %v4183_v9 = vld [vmem:[#allocation26_spill] sm:$0xff] }
 0x468   :  { %v2057_v7 = vrot.slane %v2597_v22, %v4179_v25  ;;  %v1973_v10 = vrot.slane %v2596_v27, %v4178_v37  ;;  %v1904_v48 = vrot.slane %v2602_v34, %v4180_v3  ;;  %v1820_v36 = vrot.slane %v2601_v59, %v4179_v25 }
 0x469   :  { %v2605_v63 = vpop.permute.xlu1 %2604  ;;  %v2610_v24 = vpop.permute.xlu0 %2609  ;;  %v1816_v30 = vsel %vm583_vm5, %v1815_v11, %v1811_v13 }
 0x46a   :  { %v2607_v18 = vunpack.i.h.bf16 %v2605_v63  ;;  %v2606_v12 = vunpack.i.l.bf16 %v2605_v63  ;;  %v2611_v0 = vunpack.i.l.bf16 %v2610_v24  ;;  %v2612_v47 = vunpack.i.h.bf16 %v2610_v24 }
 0x46b   :  { %v2058_v41 = vsel %vm590_vm6, %v2057_v7, %v2053_v54  ;;  %v1974_v26 = vsel %vm583_vm5, %v1973_v10, %v1969_v15  ;;  %v1905_v23 = vsel %vm597_vm7, %v1904_v48, %v1900_v2  ;;  %v1821_v24 = vsel %vm590_vm6, %v1820_v36, %v1816_v30 }
 0x46c   :  { %v2062_v5 = vrot.slane %v2607_v18, %v4180_v3  ;;  %v1978_v19 = vrot.slane %v2606_v12, %v4179_v25  ;;  %v1825_v51 = vrot.slane %v2611_v0, %v4180_v3  ;;  %v1909_v63 = vrot.slane %v2612_v47, %v4181_v32  ;;  %v4184_v12 = vld [vmem:[#allocation28_spill] sm:$0xff] }
 0x46d   :  { %v2615_v28 = vpop.permute.xlu1 %2614  ;;  %v2620_v39 = vpop.permute.xlu0 %2619 }
 0x46e   :  { %v2617_v45 = vunpack.i.h.bf16 %v2615_v28  ;;  %v2616_v46 = vunpack.i.l.bf16 %v2615_v28  ;;  %v2622_v8 = vunpack.i.h.bf16 %v2620_v39  ;;  %v2621_v42 = vunpack.i.l.bf16 %v2620_v39 }
 0x46f   :  { %v1979_v29 = vsel %vm590_vm6, %v1978_v19, %v1974_v26  ;;  %v2063_v20 = vsel %vm597_vm7, %v2062_v5, %v2058_v41  ;;  %v1826_v44 = vsel %vm597_vm7, %v1825_v51, %v1821_v24  ;;  %v1910_v14 = vsel %vm604_vm8, %v1909_v63, %v1905_v23  ;;  %v4185_v51 = vld [vmem:[#allocation29_spill] sm:$0xff]  ;;  %v4186_v24 = vld [vmem:[#allocation30_spill] sm:$0xff] }
 0x470   :  { %v2067_v61 = vrot.slane %v2617_v45, %v4181_v32  ;;  %v1983_v57 = vrot.slane %v2616_v46, %v4180_v3  ;;  %v1914_v56 = vrot.slane %v2622_v8, %v4182_v40  ;;  %v1830_v28 = vrot.slane %v2621_v42, %v4181_v32 }
 0x471   :  { %v2625_v38 = vpop.permute.xlu1 %2624  ;;  %v2630_v17 = vpop.permute.xlu0 %2629 }
 0x472   :  { %v2627_v60 = vunpack.i.h.bf16 %v2625_v38  ;;  %v2626_v55 = vunpack.i.l.bf16 %v2625_v38  ;;  %v2631_v52 = vunpack.i.l.bf16 %v2630_v17  ;;  %v2632_v37 = vunpack.i.h.bf16 %v2630_v17 }
 0x473   :  { %v2068_v27 = vsel %vm604_vm8, %v2067_v61, %v2063_v20  ;;  %v1984_v34 = vsel %vm597_vm7, %v1983_v57, %v1979_v29  ;;  %v1915_v31 = vsel %vm611_vm9, %v1914_v56, %v1910_v14  ;;  %v1831_v17 = vsel %vm604_vm8, %v1830_v28, %v1826_v44 }
 0x474   :  { %v2072_v39 = vrot.slane %v2627_v60, %v4182_v40  ;;  %v1988_v62 = vrot.slane %v2626_v55, %v4181_v32  ;;  %v1835_v4 = vrot.slane %v2631_v52, %v4182_v40  ;;  %v1919_v59 = vrot.slane %v2632_v37, %v4183_v9 }
 0x475   :  { %v2635_v58 = vpop.permute.xlu1 %2634  ;;  %v2640_v16 = vpop.permute.xlu0 %2639 }
 0x476   :  { %v2637_v33 = vunpack.i.h.bf16 %v2635_v58  ;;  %v2636_v21 = vunpack.i.l.bf16 %v2635_v58  ;;  %v2642_v35 = vunpack.i.h.bf16 %v2640_v16  ;;  %v2641_v22 = vunpack.i.l.bf16 %v2640_v16 }
 0x477   :  { %v1989_v7 = vsel %vm604_vm8, %v1988_v62, %v1984_v34  ;;  %v2073_v10 = vsel %vm611_vm9, %v2072_v39, %v2068_v27  ;;  %v1836_v48 = vsel %vm611_vm9, %v1835_v4, %v1831_v17  ;;  %v1920_v54 = vsel %vm618_vm10, %v1919_v59, %v1915_v31  ;;  %v4187_v62 = vld [vmem:[#allocation35_spill] sm:$0xff]  ;;  %v4188_v31 = vld [vmem:[#allocation37_spill] sm:$0xff] }
 0x478   :  { %v2077_v1 = vrot.slane %v2637_v33, %v4183_v9  ;;  %v1993_v18 = vrot.slane %v2636_v21, %v4182_v40  ;;  %v1924_v0 = vrot.slane %v2642_v35, %v4184_v12  ;;  %v1840_v3 = vrot.slane %v2641_v22, %v4183_v9 }
 0x479   :  { %v2645_v6 = vpop.permute.xlu1 %2644  ;;  %v2650_v50 = vpop.permute.xlu0 %2649 }
 0x47a   :  { %v2647_v53 = vunpack.i.h.bf16 %v2645_v6  ;;  %v2646_v43 = vunpack.i.l.bf16 %v2645_v6  ;;  %v2651_v49 = vunpack.i.l.bf16 %v2650_v50  ;;  %v2652_v38 = vunpack.i.h.bf16 %v2650_v50 }
 0x47b   :  { %v2078_v2 = vsel %vm618_vm10, %v2077_v1, %v2073_v10  ;;  %v1994_v5 = vsel %vm611_vm9, %v1993_v18, %v1989_v7  ;;  %v1925_v19 = vsel %vm625_vm11, %v1924_v0, %v1920_v54  ;;  %v1841_v16 = vsel %vm618_vm10, %v1840_v3, %v1836_v48 }
 0x47c   :  { %v2082_v36 = vrot.slane %v2647_v53, %v4184_v12  ;;  %v1998_v30 = vrot.slane %v2646_v43, %v4183_v9  ;;  %v1845_v45 = vrot.slane %v2651_v49, %v4184_v12  ;;  %v1929_v58 = vrot.slane %v2652_v38, %v4185_v51 }
 0x47d   :  { %v2655_v11 = vpop.permute.xlu1 %2654  ;;  %v2660_v25 = vpop.permute.xlu0 %2659 }
 0x47e   :  { %v2657_v47 = vunpack.i.h.bf16 %v2655_v11  ;;  %v2656_v13 = vunpack.i.l.bf16 %v2655_v11  ;;  %v2662_v15 = vunpack.i.h.bf16 %v2660_v25  ;;  %v2661_v41 = vunpack.i.l.bf16 %v2660_v25 }
 0x47f   :  { %v1999_v55 = vsel %vm618_vm10, %v1998_v30, %v1994_v5  ;;  %v2083_v61 = vsel %vm625_vm11, %v2082_v36, %v2078_v2  ;;  %v1846_v57 = vsel %vm625_vm11, %v1845_v45, %v1841_v16  ;;  %v1930_v29 = vsel %vm632_vm12, %v1929_v58, %v1925_v19  ;;  %v2196_v5 = vld [vmem:[%s3965_s6] ss:$0 sm:$0xff] }
 0x480   :  { %v2087_v32 = vrot.slane %v2657_v47, %v4185_v51  ;;  %v2003_v63 = vrot.slane %v2656_v13, %v4184_v12  ;;  %v1934_v42 = vrot.slane %v2662_v15, %v4186_v24  ;;  %v1850_v6 = vrot.slane %v2661_v41, %v4185_v51 }
 0x481   :  { %v2665_v46 = vpop.permute.xlu1 %2664  ;;  %v2670_v8 = vpop.permute.xlu0 %2669 }
 0x482   :  { %v2667_v26 = vunpack.i.h.bf16 %v2665_v46  ;;  %v2666_v23 = vunpack.i.l.bf16 %v2665_v46  ;;  %v2671_v60 = vunpack.i.l.bf16 %v2670_v8  ;;  %v2672_v40 = vunpack.i.h.bf16 %v2670_v8 }
 0x483   :  { %v2004_v21 = vsel %vm625_vm11, %v2003_v63, %v1999_v55  ;;  %v2088_v35 = vsel %vm632_vm12, %v2087_v32, %v2083_v61  ;;  %v1935_v28 = vsel %vm639_vm13, %v1934_v42, %v1930_v29  ;;  %v1851_v25 = vsel %vm632_vm12, %v1850_v6, %v1846_v57 }
 0x484   :  { %v2092_v50 = vrot.slane %v2667_v26, %v4186_v24  ;;  %v2008_v14 = vrot.slane %v2666_v23, %v4185_v51  ;;  %v1855_v39 = vrot.slane %v2671_v60, %v4186_v24  ;;  %v1939_v22 = vrot.slane %v2672_v40, %v4187_v62 }
 0x485   :  { %v2675_v56 = vpop.permute.xlu1 %2674  ;;  %v2680_v52 = vpop.permute.xlu0 %2679 }
 0x486   :  { %v2677_v20 = vunpack.i.h.bf16 %v2675_v56  ;;  %v2676_v44 = vunpack.i.l.bf16 %v2675_v56  ;;  %v2682_v37 = vunpack.i.h.bf16 %v2680_v52  ;;  %v2681_v33 = vunpack.i.l.bf16 %v2680_v52 }
 0x487   :  { %v2009_v1 = vsel %vm632_vm12, %v2008_v14, %v2004_v21  ;;  %v2093_v18 = vsel %vm639_vm13, %v2092_v50, %v2088_v35  ;;  %v1856_v0 = vsel %vm639_vm13, %v1855_v39, %v1851_v25  ;;  %v1940_v48 = vsel %vm646_vm14, %v1939_v22, %v1935_v28 }
 0x488   :  { %v2097_v27 = vrot.slane %v2677_v20, %v4187_v62  ;;  %v2013_v34 = vrot.slane %v2676_v44, %v4186_v24  ;;  %v1944_v4 = vrot.slane %v2682_v37, %v4188_v31  ;;  %v1860_v53 = vrot.slane %v2681_v33, %v4187_v62 }
 0x489   :  { %v2685_v9 = vpop.permute.xlu1 %2684  ;;  %v2690_v59 = vpop.permute.xlu0 %2689 }
 0x48a   :  { %v2687_v43 = vunpack.i.h.bf16 %v2685_v9  ;;  %v2686_v49 = vunpack.i.l.bf16 %v2685_v9  ;;  %v2692_v11 = vunpack.i.h.bf16 %v2690_v59  ;;  %v2691_v12 = vunpack.i.l.bf16 %v2690_v59 }
 0x48b   :  { %v2014_v10 = vsel %vm639_vm13, %v2013_v34, %v2009_v1  ;;  %v2098_v47 = vsel %vm646_vm14, %v2097_v27, %v2093_v18  ;;  %v1945_v15 = vsel %vm653_vm15, %v1944_v4, %v1940_v48  ;;  %v1861_v36 = vsel %vm646_vm14, %v1860_v53, %v1856_v0 }
 0x48c   :  { %v2102_v38 = vrot.slane %v2687_v43, %v4188_v31  ;;  %v2018_v17 = vrot.slane %v2686_v49, %v4187_v62  ;;  %v2023_v7 = vrot.slane %v2692_v11, %v4188_v31  ;;  %v1865_v3 = vrot.slane %v2691_v12, %v4188_v31 }
 0x48e   :  { %v2019_v13 = vsel %vm646_vm14, %v2018_v17, %v2014_v10  ;;  %v2103_v54 = vsel %vm653_vm15, %v2102_v38, %v2098_v47  ;;  %v1866_v45 = vsel %vm653_vm15, %v1865_v3, %v1861_v36 }
 0x48f   :  { %v2105_v30 = vsel %vm892_vm0, %v2103_v54, %v1945_v15  ;;  %v2024_v46 = vsel %vm653_vm15, %v2023_v7, %v2019_v13 }
 0x490   :  { %2172 = vmatprep.mubr.f32.mxu0 %v2105_v30  ;;  %v2104_v8 = vsel %vm892_vm0, %v2024_v46, %v1866_v45 }
 0x491   :  { %2173 = vmatmul.mubr.f32.vlgmr.msra.gmra.mrb[2].mxu0 %v2104_v8 }
 0x564   :  { %v2423_v2 = vpop.f32.mrb[2].mxu0 }
 0x565   :  { %v2424_v19 = vpop.f32.mrb[3].mxu0 }
 0x566   :  { %v2425_v51 = vadd.f32 %v2424_v19, %v2423_v2 }
 0x568   :  { %v2175_v58 = vadd.f32 %v2425_v51, %v2196_v5 }
 0x56a   :  { %2178 = vst [vmem:[#allocation7] sm:$0x3] %v2175_v58 }
 0x56b   :  { %2756 = shalt.err (!%p2753_p6)
}
 0x56c   :  { %s2757_s12 = scalar_lea.hbm %s3966_s7, 32 }
 0x56d   :  { %p2758_p7 = scmp.ne.s32.totalorder %s3966_s7, %s2757_s12  ;;  %p2761_p8 = scmp.lt.u32.totalorder %s2757_s12, %s3966_s7 }
 0x56f   :  { %p2763_p9 = pnand %p2761_p8, %p2758_p7 }
 0x571   :  { %2766 = shalt.err (!%p2763_p9)
}
 0x572   :  { %2188 = dma.vmem_to_hbm [thread:$0]  %s2186_s9, 32, %s3966_s7, [#allocation4]  }
 0x573   :  { %2771 = dma.done.wait [#allocation4], 32  }
 0x574   :  { %2772 = vsyncadd [#allocation4], 4294967264 }
 0x575   :  { %2192 = vsyncpa [#allocation3], 1 }
 0x576   :  { %2193 = vsyncpa [#allocation6], 1 }
 0x577   :  { %2194 = vsyncpa [#allocation4], 1 }

</bundles_post_ra>
